<compile_context>
chip_gen: v7x
topology: tpu7x:2x2x1
jax: 0.10.0
libtpu: 0.0.40
codegen_flags: <defaults>
</compile_context>

<pallas_src>
from functools import partial

import jax
import jax.numpy as jnp
import numpy as np
from jax.experimental import pallas as pl
from jax.experimental.pallas import tpu as pltpu

MIN_DEG = 0
MAX_DEG = 5
SCALES = tuple(float(2 ** i) for i in range(MIN_DEG, MAX_DEG))
L = len(SCALES)

_LANES = 128


def _pe_kernel(x_ref, out_ref, *, scales):
    """y is None path.  x_ref: (D, rb, 128); out_ref: (2*L*D + D, rb, 128)."""
    x = x_ref[...]
    # Concat over scales is along the major (un-tiled) axis -> no lane/sublane shuffles.
    xe = jnp.concatenate([x * s for s in scales], axis=0)           # (L*D, rb, 128)
    # Reference second half is sin(xe + pi/2) == cos(xe).
    out_ref[...] = jnp.concatenate([jnp.sin(xe), jnp.cos(xe), x], axis=0)


def _pe_kernel_y(x_ref, y_ref, xo_ref, yo_ref, *, scales):
    """Integrated positional encoding (y provided)."""
    x = x_ref[...]
    y = y_ref[...]
    xe = jnp.concatenate([x * s for s in scales], axis=0)           # (L*D, rb, 128)
    ye = jnp.concatenate([y * (s * s) for s in scales], axis=0)     # (L*D, rb, 128)

    s_x = jnp.sin(xe)                       # sin of first half of x_enc
    c_x = jnp.cos(xe)                       # == sin(xe + pi/2)  (second half)
    e = jnp.exp(-0.5 * ye)                  # half-width: y_enc = [ye, ye]
    e2 = e * e
    e4 = e2 * e2                            # == exp(-2 * ye)

    xr1 = e * s_x
    xr2 = e * c_x
    # cos(2t) = 1 - 2 sin(t)^2 ;  cos(2(t + pi/2)) = 1 - 2 cos(t)^2
    yr1 = jnp.maximum(0.5 * (1.0 - e4 * (1.0 - 2.0 * s_x * s_x)) - xr1 * xr1, 0.0)
    yr2 = jnp.maximum(0.5 * (1.0 - e4 * (1.0 - 2.0 * c_x * c_x)) - xr2 * xr2, 0.0)

    xo_ref[...] = jnp.concatenate([xr1, xr2, x], axis=0)            # (2*L*D + D, rb, 128)
    yo_ref[...] = jnp.concatenate([yr1, yr2], axis=0)               # (2*L*D, rb, 128)


def _round_up(n, m):
    return ((n + m - 1) // m) * m


def positional_encoding(x, y=None, *, max_rows_block=64):
    """JAX wrapper matching PositionalEncoding(min_deg=0, max_deg=5).forward."""
    orig_lead = x.shape[:-1]
    D = x.shape[-1]
    N = int(np.prod(orig_lead, dtype=np.int64)) if orig_lead else 1
    d_enc = 2 * L * D
    d_out = d_enc + D
    itemsize = jnp.dtype(x.dtype).itemsize

    # Lane-dense layout: point index n -> (row, lane) = (n // 128, n % 128).
    nr = _round_up(N, _LANES) // _LANES
    rows_blk = min(max_rows_block, nr)               # 64*128 = 8192 points / grid step
    nr_pad = _round_up(nr, rows_blk)
    n_pad = nr_pad * _LANES

    def to_lane_dense(a):
        a2 = a.reshape(N, D).T                        # (D, N)
        a2 = jnp.pad(a2, ((0, 0), (0, n_pad - N)))
        return a2.reshape(D, nr_pad, _LANES)

    def from_lane_dense(o, feat):
        o2 = o.reshape(feat, n_pad)[:, :N].T          # (N, feat)
        return o2.reshape(*orig_lead, feat)

    x3 = to_lane_dense(x)
    grid = (nr_pad // rows_blk,)
    cparams = pltpu.CompilerParams(dimension_semantics=("parallel",))
    in_spec = pl.BlockSpec((D, rows_blk, _LANES), lambda i: (0, i, 0))

    if y is None:
        cost = pl.CostEstimate(
            flops=2 * L * D * n_pad,
            transcendentals=2 * L * D * n_pad,
            bytes_accessed=(D + d_out) * n_pad * itemsize,
        )
        out = pl.pallas_call(
            partial(_pe_kernel, scales=SCALES),
            out_shape=jax.ShapeDtypeStruct((d_out, nr_pad, _LANES), x.dtype),
            grid=grid,
            in_specs=[in_spec],
            out_specs=pl.BlockSpec((d_out, rows_blk, _LANES), lambda i: (0, i, 0)),
            compiler_params=cparams,
            cost_estimate=cost,
        )(x3)
        return from_lane_dense(out, d_out)

    y3 = to_lane_dense(y)
    cost = pl.CostEstimate(
        flops=16 * L * D * n_pad,
        transcendentals=3 * L * D * n_pad,
        bytes_accessed=(2 * D + d_out + d_enc) * n_pad * itemsize,
    )
    xo, yo = pl.pallas_call(
        partial(_pe_kernel_y, scales=SCALES),
        out_shape=(
            jax.ShapeDtypeStruct((d_out, nr_pad, _LANES), x.dtype),
            jax.ShapeDtypeStruct((d_enc, nr_pad, _LANES), x.dtype),
        ),
        grid=grid,
        in_specs=[in_spec, in_spec],
        out_specs=(
            pl.BlockSpec((d_out, rows_blk, _LANES), lambda i: (0, i, 0)),
            pl.BlockSpec((d_enc, rows_blk, _LANES), lambda i: (0, i, 0)),
        ),
        compiler_params=cparams,
        cost_estimate=cost,
    )(x3, y3)
    return from_lane_dense(xo, d_out), from_lane_dense(yo, d_enc)


# -------------------- pure-JAX reference (mirrors the torch code) --------------------
def _ref_forward(x, y=None):
    scales = jnp.asarray(SCALES, dtype=x.dtype)
    shape = list(x.shape[:-1]) + [-1]
    x_enc = (x[..., None, :] * scales[:, None]).reshape(shape)
    x_enc = jnp.concatenate((x_enc, x_enc + 0.5 * jnp.pi), -1)
    if y is not None:
        y_enc = (y[..., None, :] * (scales[:, None] ** 2)).reshape(shape)
        y_enc = jnp.concatenate((y_enc, y_enc), -1)
        x_ret = jnp.exp(-0.5 * y_enc) * jnp.sin(x_enc)
        y_ret = jnp.maximum(
            jnp.zeros_like(y_enc),
            0.5 * (1 - jnp.exp(-2 * y_enc) * jnp.cos(2 * x_enc)) - x_ret ** 2,
        )
        x_ret = jnp.concatenate([x_ret, x], axis=-1)
        return x_ret, y_ret
    x_ret = jnp.sin(x_enc)
    return jnp.concatenate([x_ret, x], axis=-1)


if __name__ == "__main__":
    key = jax.random.PRNGKey(0)
    kx, ky = jax.random.split(key)
    # batch=2, points=16, coord dim=3  ->  flattened rows N = 32
    x = jax.random.normal(kx, (2, 16, 3), dtype=jnp.float32)
    y = jax.random.uniform(ky, (2, 16, 3), dtype=jnp.float32)  # variances >= 0

    # y=None path
    out = positional_encoding(x)
    jax.block_until_ready(out)
    ref = _ref_forward(x)
    assert out.shape == ref.shape == (2, 16, 2 * L * 3 + 3)
    assert jnp.allclose(out, ref, atol=1e-5, rtol=1e-5)

    # y provided path (integrated positional encoding)
    xo, yo = positional_encoding(x, y)
    jax.block_until_ready((xo, yo))
    rx, ry = _ref_forward(x, y)
    assert xo.shape == rx.shape and yo.shape == ry.shape
    assert jnp.allclose(xo, rx, atol=1e-5, rtol=1e-5)
    assert jnp.allclose(yo, ry, atol=1e-5, rtol=1e-5)

    # Multi-block grid + tail-padding path (N = 9000 -> 2 grid steps, padded tail).
    kx2, ky2 = jax.random.split(ky)
    x2 = jax.random.normal(kx2, (3, 3000, 3), dtype=jnp.float32)
    y2 = jax.random.uniform(ky2, (3, 3000, 3), dtype=jnp.float32)
    xo2, yo2 = positional_encoding(x2, y2)
    jax.block_until_ready((xo2, yo2))
    rx2, ry2 = _ref_forward(x2, y2)
    assert jnp.allclose(xo2, rx2, atol=1e-5, rtol=1e-5)
    assert jnp.allclose(yo2, ry2, atol=1e-5, rtol=1e-5)

    print("KERNEL_OK")
</pallas_src>

<mosaic_0001>
module attributes {stable_mosaic.version = 11 : i64} {
  func.func @_pe_kernel(%arg0: i32, %arg1: memref<3x1x128xf32, #tpu.memory_space<vmem>>, %arg2: memref<33x1x128xf32, #tpu.memory_space<vmem>>) attributes {dimension_semantics = [#tpu.dimension_semantics<parallel>], iteration_bounds = array<i64: 1>, scalar_prefetch = 0 : i64, scratch_operands = 0 : i64, tpu.core_type = #tpu.core_type<tc>, window_params = [{transform_indices = @transform_0, window_bounds = array<i64: 3, 1, 128>}, {transform_indices = @transform_1, window_bounds = array<i64: 33, 1, 128>}]} {
    %c0 = arith.constant 0 : index
    %c0_0 = arith.constant 0 : index
    %c0_1 = arith.constant 0 : index
    %0 = vector.load %arg1[%c0, %c0_0, %c0_1] : memref<3x1x128xf32, #tpu.memory_space<vmem>>, vector<3x1x128xf32>
    %cst = arith.constant 1.000000e+00 : f32
    %1 = vector.broadcast %cst : f32 to vector<3x1x128xf32>
    %2 = arith.mulf %0, %1 : vector<3x1x128xf32>
    %cst_2 = arith.constant 2.000000e+00 : f32
    %3 = vector.broadcast %cst_2 : f32 to vector<3x1x128xf32>
    %4 = arith.mulf %0, %3 : vector<3x1x128xf32>
    %cst_3 = arith.constant 4.000000e+00 : f32
    %5 = vector.broadcast %cst_3 : f32 to vector<3x1x128xf32>
    %6 = arith.mulf %0, %5 : vector<3x1x128xf32>
    %cst_4 = arith.constant 8.000000e+00 : f32
    %7 = vector.broadcast %cst_4 : f32 to vector<3x1x128xf32>
    %8 = arith.mulf %0, %7 : vector<3x1x128xf32>
    %cst_5 = arith.constant 1.600000e+01 : f32
    %9 = vector.broadcast %cst_5 : f32 to vector<3x1x128xf32>
    %10 = arith.mulf %0, %9 : vector<3x1x128xf32>
    %11 = tpu.concatenate %2, %4, %6, %8, %10 in 0 : vector<3x1x128xf32>, vector<3x1x128xf32>, vector<3x1x128xf32>, vector<3x1x128xf32>, vector<3x1x128xf32> -> vector<15x1x128xf32>
    %12 = math.sin %11 : vector<15x1x128xf32>
    %13 = math.cos %11 : vector<15x1x128xf32>
    %14 = tpu.concatenate %12, %13, %0 in 0 : vector<15x1x128xf32>, vector<15x1x128xf32>, vector<3x1x128xf32> -> vector<33x1x128xf32>
    %c0_6 = arith.constant 0 : index
    %c0_7 = arith.constant 0 : index
    %c0_8 = arith.constant 0 : index
    %15 = vector.load %arg2[%c0_6, %c0_7, %c0_8] : memref<33x1x128xf32, #tpu.memory_space<vmem>>, vector<33x1x128xf32>
    tpu.vector_store %arg2[%c0_6, %c0_7, %c0_8], %14 {strides = array<i32>} : memref<33x1x128xf32, #tpu.memory_space<vmem>>, vector<33x1x128xf32>,
    return
  }
  func.func @transform_0(%arg0: i32) -> (i32, i32, i32) {
    %c0_i32 = arith.constant 0 : i32
    %c0_i32_0 = arith.constant 0 : i32
    %c0_i32_1 = arith.constant 0 : i32
    return %c0_i32, %arg0, %c0_i32_0 : i32, i32, i32
  }
  func.func @transform_1(%arg0: i32) -> (i32, i32, i32) {
    %c0_i32 = arith.constant 0 : i32
    %c0_i32_0 = arith.constant 0 : i32
    %c0_i32_1 = arith.constant 0 : i32
    return %c0_i32, %arg0, %c0_i32_0 : i32, i32, i32
  }
}

</mosaic_0001>

<bundles_post_ra>
// kernel: tpu_custom_call.1
= control target key start
LH: loop header
LB: loop body
LE: loop exit
PB: predicated region body
PF: predicated region fallthrough
CT: control target
= control target key end

     0   :  { %6 = vsyncpa [#allocation3], 0  ;;  %s5145_s0 = inlined_call_operand.hbm [shape: f32[3,1,128], index: 0, kind: input, shape index: {}]   ;;  %s5146_s1 = inlined_call_operand.hbm [shape: f32[33,1,128], index: 1, kind: output, shape index: {}]  }
   0x1   :  { %7 = vsyncpa [#allocation4], 0  ;;  %s3491_s6 = smov [#allocation2]   ;;  %s3443_s10 = scalar_lea.hbm %s5145_s0, 48 }
   0x2   :  { %s13_s7 = sshll.u32 %s3491_s6, 4  ;;  %p3444_p0 = scmp.ne.s32.totalorder %s5145_s0, %s3443_s10  ;;  %s14_s7 = int_to_ptr.vmem [resolvable:$true] %s13_s7 }
   0x3   :  { %p3447_p1 = scmp.lt.u32.totalorder %s3443_s10, %s5145_s0 }
   0x5   :  { %p3449_p2 = pnand %p3447_p1, %p3444_p0 }
   0x7   :  { %3452 = shalt.err (!%p3449_p2)
}
   0x8   :  { %s3453_s15 = scalar_lea.vmem %s14_s7, 48  ;;  %s3457_s16 = scalar_lea.vmem %s14_s7, 64 }
   0x9   :  { %p3454_p3 = scmp.ne.s32.totalorder %s14_s7, %s3453_s15  ;;  %p3458_p4 = scmp.lt.s32.totalorder %s14_s7, %s14_s7 }
   0xa   :  { %p3459_p5 = scmp.lt.s32.totalorder %s3457_s16, %s3453_s15 }
   0xc   :  { %p3460_p6 = por %p3459_p5, %p3458_p4 }
   0xe   :  { %p3461_p7 = pnand %p3460_p6, %p3454_p3 }
  0x10   :  { %3464 = shalt.err (!%p3461_p7)
}
  0x11   :  { %s3492_s17 = smov 16   ;;  %s3493_s18 = smov 1  }
  0x12   :  { %19 = dma.hbm_to_vmem [thread:$0]  %s5145_s0, 48, %s14_s7, [#allocation3], %s3492_s17, %s3492_s17, %s3493_s18  }
  0x13   :  { %3487 = dma.done.wait [#allocation3], 48  }
  0x14   :  { %3488 = vsyncadd [#allocation3], 4294967248  ;;  %v3526_v0 = vld [vmem:[#allocation2] sm:$0x1]  ;;  %v3528_v1 = vld [vmem:[#allocation2 + $0x1] sm:$0x1] }
  0x15   :  { %v3530_v2 = vld [vmem:[#allocation2 + $0x2] sm:$0x1]  ;;  %v38_v3 = vand.u32 2147483647, %v3526_v0  ;;  %v41_v4 = vand.u32 2139095040, %v3526_v0  ;;  %v145_v6 = vand.u32 2139095040, %v3528_v1 }
  0x16   :  { %3173 = vst [vmem:[#allocation5 + $0x1e] sm:$0x1] %v3526_v0  ;;  %3174 = vst [vmem:[#allocation5 + $0x1f] sm:$0x1] %v3528_v1  ;;  %v142_v5 = vand.u32 2147483647, %v3528_v1 }
  0x17   :  { %3175 = vst [vmem:[#allocation5 + $0x20] sm:$0x1] %v3530_v2  ;;  %v42_v7 = vshrl.u32 %v41_v4, 23  ;;  %v45_v8 = vand.u32 8388607, %v38_v3  ;;  %v146_v9 = vshrl.u32 %v145_v6, 23 }
  0x18   :  { %v149_v10 = vand.u32 8388607, %v142_v5  ;;  %v249_v11 = vand.u32 2139095040, %v3530_v2  ;;  %v246_v19 = vand.u32 2147483647, %v3530_v2  ;;  %v3546_v22 = vmul.f32 2.0, %v3526_v0 }
  0x19   :  { %v3193_v12 = vadd.s32 4294967169, %v42_v7  ;;  %v3197_v13 = vadd.s32 4294967169, %v146_v9  ;;  %v46_v15 = vor.u32 8388608, %v45_v8  ;;  %v5170_v32 = vmov 683565275   ;;  %s3500_s0 = smov [#allocation5]  }
  0x1a   :  { %v250_v14 = vshrl.u32 %v249_v11, 23  ;;  %v150_v17 = vor.u32 8388608, %v149_v10  ;;  %v3554_v29 = vand.u32 8388607, %v246_v19  ;;  %v5165_v34 = vmov 2475754826  }
  0x1b   :  { %v48_v16 = vadd.s32 1, %v3193_v12  ;;  %v152_v18 = vadd.s32 1, %v3197_v13  ;;  %v3548_v25 = vshll.u32 %v46_v15, 8  ;;  %v5163_v36 = vmov 2131351028   ;;  %s3181_s21 = sshll.u32 %s3500_s0, 4  ;;  %s3182_s21 = int_to_ptr.vmem [resolvable:$true] %s3181_s21 }
  0x1c   :  { %v3201_v20 = vadd.s32 4294967169, %v250_v14  ;;  %v3550_v28 = vshll.u32 %v150_v17, 8  ;;  %v5158_v38 = vmov 2102212464   ;;  %v5193_v40 = vmov 920167782   ;;  %p3470_p9 = scmp.lt.s32.totalorder %s3182_s21, %s3182_s21 }
  0x1d   :  { %vm49_vm0 = vcmp.gt.s32.totalorder %v48_v16, 0  ;;  %vm153_vm1 = vcmp.gt.s32.totalorder %v152_v18, 0  ;;  %v5175_v48 = vmov 1326507024   ;;  %vm40_vm13 = vcmp.lt.s32.totalorder %v3526_v0, 0  ;;  %s3465_s22 = scalar_lea.vmem %s3182_s21, 528 }
  0x1e   :  { %v50_v21 = vsel %vm49_vm0, %v48_v16, 0  ;;  %v154_v26 = vsel %vm153_vm1, %v152_v18, 0  ;;  %v3556_v30 = vadd.s32 1, %v3201_v20  ;;  %vm144_vm14 = vcmp.lt.s32.totalorder %v3528_v1, 0  ;;  %p3466_p8 = scmp.ne.s32.totalorder %s3182_s21, %s3465_s22  ;;  %s3469_s23 = scalar_lea.vmem %s3182_s21, 544 }
  0x1f   :  { %v51_v23 = vshrl.u32 %v50_v21, 5  ;;  %v52_v24 = vand.u32 31, %v50_v21  ;;  %v156_v27 = vand.u32 31, %v154_v26  ;;  %v3563_v42 = vshrl.u32 %v154_v26, 5  ;;  %p3471_p10 = scmp.lt.s32.totalorder %s3469_s23, %s3465_s22 }
  0x20   :  { %vm257_vm6 = vcmp.gt.s32.totalorder %v3556_v30, 0  ;;  %vm3659_vm1 = vcmp.le.f32.partialorder %v38_v3, 0.7853982 }
  0x21   :  { %v53_v31 = vsub.s32 32, %v52_v24  ;;  %v55_v33 = vshll.u32 %v5170_v32, %v52_v24  ;;  %v58_v35 = vshll.u32 %v5165_v34, %v52_v24  ;;  %v61_v37 = vshll.u32 %v5163_v36, %v52_v24  ;;  %p3472_p11 = por %p3471_p10, %p3470_p9 }
  0x22   :  { %v64_v39 = vshll.u32 %v5158_v38, %v52_v24  ;;  %v67_v41 = vshll.u32 %v5193_v40, %v52_v24  ;;  %vm70_vm2 = vcmp.lt.s32.totalorder %v51_v23, 1  ;;  %vm71_vm3 = vcmp.lt.s32.totalorder %v51_v23, 2 }
  0x23   :  { %v54_v43 = vshrl.u32 %v5170_v32, %v53_v31  ;;  %v56_v44 = vshrl.u32 %v5165_v34, %v53_v31  ;;  %v59_v45 = vshrl.u32 %v5163_v36, %v53_v31  ;;  %v62_v46 = vshrl.u32 %v5158_v38, %v53_v31  ;;  %p3473_p12 = pnand %p3472_p11, %p3466_p8 }
  0x24   :  { %v65_v47 = vshrl.u32 %v5193_v40, %v53_v31  ;;  %v68_v49 = vshrl.u32 %v5175_v48, %v53_v31  ;;  %vm73_vm4 = vcmp.lt.s32.totalorder %v51_v23, 4  ;;  %v157_v53 = vsub.s32 32, %v156_v27 }
  0x25   :  { %v57_v50 = vor.u32 %v56_v44, %v55_v33  ;;  %v60_v51 = vor.u32 %v59_v45, %v58_v35  ;;  %v63_v52 = vor.u32 %v62_v46, %v61_v37  ;;  %vm72_vm5 = vcmp.lt.s32.totalorder %v51_v23, 3 }
  0x26   :  { %v66_v54 = vor.u32 %v65_v47, %v64_v39  ;;  %v69_v55 = vor.u32 %v68_v49, %v67_v41  ;;  %v159_v56 = vshll.u32 %v5170_v32, %v156_v27  ;;  %v162_v4 = vshll.u32 %v5165_v34, %v156_v27 }
  0x27   :  { %v74_v57 = vsel %vm70_vm2, %v54_v43, %v57_v50  ;;  %v75_v58 = vsel %vm73_vm4, %v63_v52, 2102212464  ;;  %v78_v59 = vsel %vm70_vm2, %v57_v50, %v60_v51  ;;  %v82_v60 = vsel %vm70_vm2, %v60_v51, %v63_v52 }
  0x28   :  { %v76_v61 = vsel %vm72_vm5, %v60_v51, %v75_v58  ;;  %v79_v62 = vsel %vm73_vm4, %v66_v54, 920167782  ;;  %v83_v63 = vsel %vm73_vm4, %v69_v55, 1326507024  ;;  %v158_v8 = vshrl.u32 %v5170_v32, %v157_v53 }
  0x29   :  { %v80_v6 = vsel %vm72_vm5, %v63_v52, %v79_v62  ;;  %v84_v7 = vsel %vm72_vm5, %v66_v54, %v83_v63  ;;  %v160_v9 = vshrl.u32 %v5165_v34, %v157_v53  ;;  %v77_v10 = vsel %vm71_vm3, %v74_v57, %v76_v61 }
  0x2a   :  { %v81_v11 = vsel %vm71_vm3, %v78_v59, %v80_v6  ;;  %v85_v12 = vsel %vm71_vm3, %v82_v60, %v84_v7  ;;  %v163_v13 = vshrl.u32 %v5163_v36, %v157_v53  ;;  %v165_v21 = vshll.u32 %v5163_v36, %v156_v27 }
  0x2b   :  { %v3584_v14 = vmul.u32.u64.low %v3548_v25, %v85_v12  ;;  %v3585_v15 = vmul.u32.u64.high %v3548_v25, %v85_v12, %v3584_v14  ;;  %v3588_v16 = vmul.u32.u64.low %v3548_v25, %v81_v11  ;;  %v3589_v17 = vmul.u32.u64.high %v3548_v25, %v81_v11, %v3588_v16 }
  0x2c   :  { %v161_v18 = vor.u32 %v160_v9, %v159_v56  ;;  %v164_v20 = vor.u32 %v163_v13, %v162_v4  ;;  %v166_v24 = vshrl.u32 %v5158_v38, %v157_v53  ;;  %v168_v23 = vshll.u32 %v5158_v38, %v156_v27 }
  0x2d   :  { %v169_v26 = vshrl.u32 %v5193_v40, %v157_v53  ;;  %v171_v31 = vshll.u32 %v5193_v40, %v156_v27  ;;  %v172_v33 = vshrl.u32 %v5175_v48, %v157_v53  ;;  %v93_v35 = vmul.u32 %v3548_v25, %v77_v10 }
  0x2e   :  { %v167_v37 = vor.u32 %v166_v24, %v165_v21  ;;  %vm174_vm7 = vcmp.lt.s32.totalorder %v3563_v42, 1  ;;  %vm175_vm8 = vcmp.lt.s32.totalorder %v3563_v42, 2  ;;  %vm95_vm9 = vc.u32 %v3585_v15, %v3588_v16 }
  0x2f   :  { %v96_v39 = vadd.s32 1, %v3589_v17  ;;  %v170_v41 = vor.u32 %v169_v26, %v168_v23  ;;  %vm176_vm10 = vcmp.lt.s32.totalorder %v3563_v42, 3  ;;  %v173_v43 = vor.u32 %v172_v33, %v171_v31 }
  0x30   :  { %vm177_vm11 = vcmp.lt.s32.totalorder %v3563_v42, 4  ;;  %v178_v27 = vsel %vm174_vm7, %v158_v8, %v161_v18  ;;  %v182_v44 = vsel %vm174_vm7, %v161_v18, %v164_v20  ;;  %v186_v47 = vsel %vm174_vm7, %v164_v20, %v167_v37 }
  0x31   :  { %v97_v25 = vsel %vm95_vm9, %v96_v39, %v3589_v17  ;;  %v179_v45 = vsel %vm177_vm11, %v167_v37, 2102212464  ;;  %v183_v46 = vsel %vm177_vm11, %v170_v41, 920167782  ;;  %v187_v52 = vsel %vm177_vm11, %v173_v43, 1326507024 }
  0x32   :  { %v98_v49 = vadd.s32 %v97_v25, %v93_v35  ;;  %v180_v50 = vsel %vm176_vm10, %v164_v20, %v179_v45  ;;  %v184_v51 = vsel %vm176_vm10, %v167_v37, %v183_v46  ;;  %v188_v55 = vsel %vm176_vm10, %v170_v41, %v187_v52 }
  0x33   :  { %v181_v53 = vsel %vm175_vm8, %v178_v27, %v180_v50  ;;  %v185_v54 = vsel %vm175_vm8, %v182_v44, %v184_v51  ;;  %v258_v56 = vsel %vm257_vm6, %v3556_v30, 0  ;;  %v189_v58 = vsel %vm175_vm8, %v186_v47, %v188_v55 }
  0x34   :  { %v99_v57 = vadd.s32 536870912, %v98_v49  ;;  %v3617_v59 = vmul.u32.u64.low %v3550_v28, %v185_v54  ;;  %v3618_v60 = vmul.u32.u64.high %v3550_v28, %v185_v54, %v3617_v59  ;;  %v254_v4 = vor.u32 8388608, %v3554_v29 }
  0x35   :  { %v3622_v61 = vmul.u32.u64.low %v3550_v28, %v189_v58  ;;  %v3623_v62 = vmul.u32.u64.high %v3550_v28, %v189_v58, %v3622_v61  ;;  %v260_v6 = vand.u32 31, %v258_v56  ;;  %v353_v7 = vand.u32 2139095040, %v3546_v22 }
  0x36   :  { %v100_v63 = vshrl.u32 %v99_v57, 30  ;;  %v197_v30 = vmul.u32 %v3550_v28, %v181_v53  ;;  %v200_v42 = vadd.s32 1, %v3618_v60  ;;  %v3631_v10 = vshrl.u32 %v258_v56, 5 }
  0x37   :  { %v261_v9 = vsub.s32 32, %v260_v6  ;;  %vm199_vm12 = vc.u32 %v3623_v62, %v3617_v59  ;;  %v3637_v12 = vshll.u32 %v254_v4, 8  ;;  %v354_v13 = vshrl.u32 %v353_v7, 23 }
  0x38   :  { %v101_v8 = vshll.u32 %v100_v63, 30  ;;  %v201_v29 = vsel %vm199_vm12, %v200_v42, %v3618_v60  ;;  %v263_v14 = vshll.u32 %v5170_v32, %v260_v6  ;;  %v266_v18 = vshll.u32 %v5165_v34, %v260_v6 }
  0x39   :  { %v202_v28 = vadd.s32 %v201_v29, %v197_v30  ;;  %v264_v17 = vshrl.u32 %v5165_v34, %v261_v9  ;;  %v267_v21 = vshrl.u32 %v5163_v36, %v261_v9  ;;  %v269_v24 = vshll.u32 %v5163_v36, %v260_v6 }
  0x3a   :  { %v3634_v11 = vsub.s32 %v98_v49, %v101_v8  ;;  %v270_v23 = vshrl.u32 %v5158_v38, %v261_v9  ;;  %v94_v26 = vadd.s32 %v3588_v16, %v3585_v15  ;;  %v272_v33 = vshll.u32 %v5158_v38, %v260_v6 }
  0x3b   :  { %v203_v31 = vadd.s32 536870912, %v202_v28  ;;  %vm278_vm15 = vcmp.lt.s32.totalorder %v3631_v10, 1  ;;  %v124_v37 = vsub.s32 4, %v100_v63  ;;  %v273_v39 = vshrl.u32 %v5193_v40, %v261_v9 }
  0x3c   :  { %v104_v20 = vsub.s32 0, %v3634_v11  ;;  %vm281_vm0 = vcmp.lt.s32.totalorder %v3631_v10, 4  ;;  %v262_v43 = vshrl.u32 %v5170_v32, %v261_v9  ;;  %v275_v27 = vshll.u32 %v5193_v40, %v260_v6 }
  0x3d   :  { %v204_v41 = vshrl.u32 %v203_v31, 30  ;;  %v276_v44 = vshrl.u32 %v5175_v48, %v261_v9  ;;  %v265_v25 = vor.u32 %v264_v17, %v263_v14  ;;  %v268_v45 = vor.u32 %v267_v21, %v266_v18 }
  0x3e   :  { %v3194_v35 = vmin.u32 %v104_v20, %v3634_v11  ;;  %v271_v46 = vor.u32 %v270_v23, %v269_v24  ;;  %v274_v50 = vor.u32 %v273_v39, %v272_v33  ;;  %vm279_vm2 = vcmp.lt.s32.totalorder %v3631_v10, 2 }
  0x3f   :  { %v205_v47 = vshll.u32 %v204_v41, 30  ;;  %v228_v49 = vsub.s32 4, %v204_v41  ;;  %v277_v52 = vor.u32 %v276_v44, %v275_v27  ;;  %vm280_vm3 = vcmp.lt.s32.totalorder %v3631_v10, 3 }
  0x40   :  { %v106_v16 = vclz %v3194_v35  ;;  %v283_v53 = vsel %vm281_vm0, %v271_v46, 2102212464  ;;  %v125_v3 = vsel %vm40_vm13, %v124_v37, %v100_v63  ;;  %v282_v55 = vsel %vm278_vm15, %v262_v43, %v265_v25 }
  0x41   :  { %v206_v54 = vsub.s32 %v202_v28, %v205_v47  ;;  %v287_v56 = vsel %vm281_vm0, %v274_v50, 920167782  ;;  %v229_v57 = vsel %vm144_vm14, %v228_v49, %v204_v41  ;;  %v286_v58 = vsel %vm278_vm15, %v265_v25, %v268_v45 }
  0x42   :  { %v3195_v51 = vadd.s32 4294967294, %v106_v16  ;;  %v290_v60 = vsel %vm278_vm15, %v268_v45, %v271_v46  ;;  %v284_v63 = vsel %vm280_vm3, %v268_v45, %v283_v53  ;;  %v288_v6 = vsel %vm280_vm3, %v271_v46, %v287_v56 }
  0x43   :  { %v208_v4 = vsub.s32 0, %v206_v54  ;;  %v291_v42 = vsel %vm281_vm0, %v277_v52, 1326507024  ;;  %vm3688_vm5 = vcmp.le.f32.partialorder %v142_v5, 0.7853982  ;;  %v3205_v14 = vadd.s32 4294967169, %v354_v13 }
  0x44   :  { %vm3196_vm4 = vcmp.lt.s32.totalorder %v3195_v51, 0  ;;  %v292_v28 = vsel %vm280_vm3, %v274_v50, %v291_v42  ;;  %v3700_v21 = vsel %vm3659_vm1, 0, %v125_v3  ;;  %v3704_v24 = vsel %vm3688_vm5, 0, %v229_v57 }
  0x45   :  { %v109_v61 = vsel %vm3196_vm4, 0, %v3195_v51  ;;  %v3198_v29 = vmin.u32 %v208_v4, %v206_v54  ;;  %v293_v20 = vsel %vm279_vm2, %v290_v60, %v292_v28  ;;  %v285_v13 = vsel %vm279_vm2, %v282_v55, %v284_v63 }
  0x46   :  { %v110_v7 = vsub.s32 32, %v109_v61  ;;  %v111_v30 = vshll.u32 %v3634_v11, %v109_v61  ;;  %v114_v8 = vsub.s32 4294967266, %v109_v61  ;;  %v289_v11 = vsel %vm279_vm2, %v286_v58, %v288_v6 }
  0x47   :  { %v210_v5 = vclz %v3198_v29  ;;  %v3709_v31 = vmul.u32.u64.low %v3637_v12, %v293_v20  ;;  %v3710_v33 = vmul.u32.u64.high %v3637_v12, %v293_v20, %v3709_v31  ;;  %v360_v41 = vadd.s32 1, %v3205_v14 }
  0x48   :  { %v112_v17 = vshrl.u32 %v94_v26, %v110_v7  ;;  %v115_v18 = vadd.s32 127, %v114_v8  ;;  %v3713_v37 = vmul.u32.u64.low %v3637_v12, %v289_v11  ;;  %v3714_v39 = vmul.u32.u64.high %v3637_v12, %v289_v11, %v3713_v37 }
  0x49   :  { %v3199_v35 = vadd.s32 4294967294, %v210_v5  ;;  %v198_v44 = vadd.s32 %v3617_v59, %v3623_v62  ;;  %v350_v10 = vand.u32 2147483647, %v3546_v22  ;;  %v131_v16 = vadd.s32 3, %v3700_v21 }
  0x4a   :  { %v113_v23 = vor.u32 %v112_v17, %v111_v30  ;;  %v116_v26 = vshll.u32 %v115_v18, 23  ;;  %v235_v25 = vadd.s32 3, %v3704_v24  ;;  %vm361_vm7 = vcmp.gt.s32.totalorder %v360_v41, 0 }
  0x4b   :  { %vm3200_vm6 = vcmp.lt.s32.totalorder %v3199_v35, 0  ;;  %v301_v47 = vmul.u32 %v3637_v12, %v285_v13  ;;  %vm303_vm8 = vc.u32 %v3710_v33, %v3713_v37  ;;  %v304_v59 = vadd.s32 1, %v3714_v39 }
  0x4c   :  { %v117_v43 = vor.u32 4788187, %v116_v26  ;;  %v120_v27 = vcvt.s32.f32 %v113_v23  ;;  %v213_v46 = vsel %vm3200_vm6, 0, %v3199_v35  ;;  %v357_v52 = vand.u32 8388607, %v350_v10 }
  0x4d   :  { %v214_v49 = vsub.s32 32, %v213_v46  ;;  %v215_v50 = vshll.u32 %v206_v54, %v213_v46  ;;  %v218_v51 = vsub.s32 4294967266, %v213_v46  ;;  %v362_v53 = vsel %vm361_vm7, %v360_v41, 0 }
  0x4e   :  { %v118_v45 = vand.u32 2147483647, %v117_v43  ;;  %v305_v56 = vsel %vm303_vm8, %v304_v59, %v3714_v39  ;;  %v364_v12 = vand.u32 31, %v362_v53  ;;  %v3729_v60 = vand.u32 3, %v131_v16 }
  0x4f   :  { %v216_v3 = vshrl.u32 %v198_v44, %v214_v49  ;;  %v219_v55 = vadd.s32 127, %v218_v51  ;;  %v306_v58 = vadd.s32 %v305_v56, %v301_v47  ;;  %v3731_v54 = vand.u32 3, %v235_v25 }
  0x50   :  { %v121_v62 = vmul.f32 %v120_v27, %v118_v45  ;;  %v358_v7 = vor.u32 8388608, %v357_v52  ;;  %v365_v30 = vsub.s32 32, %v364_v12  ;;  %v3738_v28 = vshrl.u32 %v362_v53, 5 }
  0x51   :  { %v217_v61 = vor.u32 %v216_v3, %v215_v50  ;;  %v220_v4 = vshll.u32 %v219_v55, 23  ;;  %v307_v6 = vadd.s32 536870912, %v306_v58  ;;  %v367_v17 = vshll.u32 %v5170_v32, %v364_v12 }
  0x52   :  { %v122_v57 = vxor.u32 2147483648, %v121_v62  ;;  %v368_v18 = vshrl.u32 %v5165_v34, %v365_v30  ;;  %vm248_vm9 = vcmp.lt.s32.totalorder %v3530_v2, 0  ;;  %v370_v20 = vshll.u32 %v5165_v34, %v364_v12 }
  0x53   :  { %v221_v42 = vor.u32 4788187, %v220_v4  ;;  %v224_v29 = vcvt.s32.f32 %v217_v61  ;;  %v308_v14 = vshrl.u32 %v307_v6, 30  ;;  %v371_v5 = vshrl.u32 %v5163_v36, %v365_v30 }
  0x54   :  { %v123_v63 = vsel %vm40_vm13, %v122_v57, %v121_v62  ;;  %vm137_vm10 = vcmp.eq.s32.totalorder %v3729_v60, 2  ;;  %v373_v13 = vshll.u32 %v5163_v36, %v364_v12  ;;  %v374_v23 = vshrl.u32 %v5158_v38, %v365_v30 }
  0x55   :  { %v126_v8 = vsel %vm3659_vm1, %v3526_v0, %v123_v63  ;;  %v222_v11 = vand.u32 2147483647, %v221_v42  ;;  %v309_v15 = vshll.u32 %v308_v14, 30  ;;  %v3748_v26 = vshll.u32 %v358_v7, 8 }
  0x56   :  { %3383 = vcosq.f32 %v126_v8  ;;  %vm134_vm11 = vcmp.eq.s32.totalorder %v3729_v60, 0  ;;  %v376_v35 = vshll.u32 %v5158_v38, %v364_v12  ;;  %v377_v39 = vshrl.u32 %v5193_v40, %v365_v30 }
  0x57   :  { %3385 = vsinq.f32 %v126_v8  ;;  %v225_v31 = vmul.f32 %v224_v29, %v222_v11  ;;  %vm382_vm12 = vcmp.lt.s32.totalorder %v3738_v28, 1  ;;  %vm133_vm13 = vcmp.lt.s32.totalorder %v3729_v60, 2 }
  0x58   :  { %v3755_v41 = vsub.s32 %v306_v58, %v309_v15  ;;  %v366_v43 = vshrl.u32 %v5170_v32, %v365_v30  ;;  %v369_v27 = vor.u32 %v368_v18, %v367_v17  ;;  %v379_v44 = vshll.u32 %v5193_v40, %v364_v12 }
  0x59   :  { %vm130_vm15 = vweird.f32 %v3526_v0  ;;  %v226_v16 = vxor.u32 2147483648, %v225_v31  ;;  %v372_v25 = vor.u32 %v371_v5, %v370_v20  ;;  %v378_v45 = vor.u32 %v377_v39, %v376_v35 }
  0x5a   :  { %v380_v46 = vshrl.u32 %v5175_v48, %v365_v30  ;;  %v312_v47 = vsub.s32 0, %v3755_v41  ;;  %v332_v49 = vsub.s32 4, %v308_v14  ;;  %v375_v50 = vor.u32 %v374_v23, %v373_v13 }
  0x5b   :  { %vm385_vm0 = vcmp.lt.s32.totalorder %v3738_v28, 4  ;;  %v227_v51 = vsel %vm144_vm14, %v226_v16, %v225_v31  ;;  %v302_v59 = vadd.s32 %v3713_v37, %v3710_v33  ;;  %vm384_vm1 = vcmp.lt.s32.totalorder %v3738_v28, 3 }
  0x5c   :  { %v3769_v62 = vmul.f32 2.0, %v3528_v1  ;;  %v230_v52 = vsel %vm3688_vm5, %v3528_v1, %v227_v51  ;;  %v3202_v53 = vmin.u32 %v312_v47, %v3755_v41  ;;  %v381_v3 = vor.u32 %v380_v46, %v379_v44 }
  0x5d   :  { %v387_v55 = vsel %vm385_vm0, %v375_v50, 2102212464  ;;  %3387 = vcosq.f32 %v230_v52  ;;  %vm383_vm14 = vcmp.lt.s32.totalorder %v3738_v28, 2  ;;  %v390_v33 = vsel %vm382_vm12, %v369_v27, %v372_v25 }
  0x5e   :  { %v391_v37 = vsel %vm385_vm0, %v378_v45, 920167782  ;;  %3389 = vsinq.f32 %v230_v52  ;;  %vm3786_vm2 = vcmp.le.f32.partialorder %v246_v19, 0.7853982  ;;  %v314_v57 = vclz %v3202_v53 }
  0x5f   :  { %v333_v58 = vsel %vm248_vm9, %v332_v49, %v308_v14  ;;  %v386_v12 = vsel %vm382_vm12, %v366_v43, %v369_v27  ;;  %v388_v63 = vsel %vm384_vm1, %v372_v25, %v387_v55  ;;  %v392_v19 = vsel %vm384_vm1, %v375_v50, %v391_v37 }
  0x60   :  { %v3782_v56 = vpop.eup %3383  ;;  %v394_v6 = vsel %vm382_vm12, %v372_v25, %v375_v50  ;;  %v3203_v30 = vadd.s32 4294967294, %v314_v57  ;;  %v393_v8 = vsel %vm383_vm14, %v390_v33, %v392_v19  ;;  %v395_v42 = vsel %vm385_vm0, %v381_v3, 1326507024 }
  0x61   :  { %v3794_v61 = vpop.eup %3385  ;;  %v5155_v4 = vxor.u32 2147483648, %v3782_v56  ;;  %v396_v14 = vsel %vm384_vm1, %v378_v45, %v395_v42  ;;  %v3816_v17 = vmul.u32.u64.low %v3748_v26, %v393_v8  ;;  %v3817_v18 = vmul.u32.u64.high %v3748_v26, %v393_v8, %v3816_v17 }
  0x62   :  { %v5156_v7 = vxor.u32 2147483648, %v3794_v61  ;;  %vm234_vm3 = vweird.f32 %v3528_v1  ;;  %vm3204_vm4 = vcmp.lt.s32.totalorder %v3203_v30, 0  ;;  %v389_v20 = vsel %vm383_vm14, %v386_v12, %v388_v63 }
  0x63   :  { %v139_v29 = vsel %vm137_vm10, %v5155_v4, %v3794_v61  ;;  %v397_v5 = vsel %vm383_vm14, %v394_v6, %v396_v14  ;;  %v317_v13 = vsel %vm3204_vm4, 0, %v3203_v30  ;;  %v405_v44 = vmul.u32 %v3748_v26, %v389_v20 }
  0x64   :  { %v136_v11 = vsel %vm134_vm11, %v3782_v56, %v5156_v7  ;;  %v3832_v23 = vmul.u32.u64.low %v3748_v26, %v397_v5  ;;  %v3833_v31 = vmul.u32.u64.high %v3748_v26, %v397_v5, %v3832_v23  ;;  %v318_v39 = vsub.s32 32, %v317_v13 }
  0x65   :  { %v140_v15 = vsel %vm133_vm13, %v136_v11, %v139_v29  ;;  %v319_v43 = vshll.u32 %v3755_v41, %v317_v13  ;;  %v322_v27 = vsub.s32 4294967266, %v317_v13  ;;  %v408_v28 = vadd.s32 1, %v3817_v18 }
  0x66   :  { %v141_v35 = vsel %vm130_vm15, nan, %v140_v15  ;;  %v454_v60 = vand.u32 2147483647, %v3769_v62  ;;  %v457_v16 = vand.u32 2139095040, %v3769_v62  ;;  %vm237_vm5 = vcmp.lt.s32.totalorder %v3731_v54, 2 }
  0x67   :  { %3143 = vst [vmem:[#allocation5] sm:$0x1] %v141_v35  ;;  %vm238_vm6 = vcmp.eq.s32.totalorder %v3731_v54, 0  ;;  %v320_v25 = vshrl.u32 %v302_v59, %v318_v39  ;;  %v323_v45 = vadd.s32 127, %v322_v27  ;;  %v3844_v46 = vpop.eup %3387  ;;  %vm241_vm7 = vcmp.eq.s32.totalorder %v3731_v54, 2 }
  0x68   :  { %v3849_v41 = vsel %vm3786_vm2, 0, %v333_v58  ;;  %vm407_vm8 = vc.u32 %v3833_v31, %v3816_v17  ;;  %v458_v26 = vshrl.u32 %v457_v16, 23  ;;  %v3852_v47 = vpop.eup %3389  ;;  %v5151_v49 = vxor.u32 2147483648, %v3844_v46 }
  0x69   :  { %v321_v50 = vor.u32 %v320_v25, %v319_v43  ;;  %v324_v51 = vshll.u32 %v323_v45, 23  ;;  %v409_v59 = vsel %vm407_vm8, %v408_v28, %v3817_v18  ;;  %v5152_v52 = vxor.u32 2147483648, %v3852_v47 }
  0x6a   :  { %v410_v53 = vadd.s32 %v409_v59, %v405_v44  ;;  %v3209_v3 = vadd.s32 4294967169, %v458_v26  ;;  %v461_v55 = vand.u32 8388607, %v454_v60  ;;  %v243_v33 = vsel %vm241_vm7, %v5151_v49, %v3852_v47 }
  0x6b   :  { %v325_v37 = vor.u32 4788187, %v324_v51  ;;  %v328_v57 = vcvt.s32.f32 %v321_v50  ;;  %v3863_v58 = vmul.f32 2.0, %v3530_v2  ;;  %v240_v12 = vsel %vm238_vm6, %v3844_v46, %v5152_v52 }
  0x6c   :  { %v411_v63 = vadd.s32 536870912, %v410_v53  ;;  %v464_v19 = vadd.s32 1, %v3209_v3  ;;  %v244_v6 = vsel %vm237_vm5, %v240_v12, %v243_v33  ;;  %v339_v8 = vadd.s32 3, %v3849_v41 }
  0x6d   :  { %5237 = vst [vmem:[#allocation8_spill] sm:$0xff] %v3863_v58  ;;  %v326_v30 = vand.u32 2147483647, %v325_v37  ;;  %v245_v42 = vsel %vm234_vm3, nan, %v244_v6  ;;  %v462_v14 = vor.u32 8388608, %v461_v55  ;;  %v561_v20 = vand.u32 2139095040, %v3863_v58 }
  0x6e   :  { %v412_v29 = vshrl.u32 %v411_v63, 30  ;;  %vm465_vm10 = vcmp.gt.s32.totalorder %v464_v19, 0  ;;  %3144 = vst [vmem:[#allocation5 + $0x1] sm:$0x1] %v245_v42  ;;  %v3876_v23 = vand.u32 3, %v339_v8  ;;  %vm352_vm11 = vcmp.lt.s32.totalorder %v3546_v22, 0 }
  0x6f   :  { %v329_v18 = vmul.f32 %v328_v57, %v326_v30  ;;  %v466_v11 = vsel %vm465_vm10, %v464_v19, 0  ;;  %v558_v54 = vand.u32 2147483647, %v3863_v58  ;;  %v3881_v35 = vadd.s32 %v3816_v17, %v3833_v31 }
  0x70   :  { %v413_v5 = vshll.u32 %v412_v29, 30  ;;  %v468_v15 = vand.u32 31, %v466_v11  ;;  %v3885_v27 = vshll.u32 %v462_v14, 8  ;;  %v562_v25 = vshrl.u32 %v561_v20, 23 }
  0x71   :  { %v330_v13 = vxor.u32 2147483648, %v329_v18  ;;  %v467_v31 = vshrl.u32 %v466_v11, 5  ;;  %v436_v3 = vsub.s32 4, %v412_v29  ;;  %v3905_v57 = vand.u32 8388607, %v558_v54 }
  0x72   :  { %v3883_v39 = vsub.s32 %v410_v53, %v413_v5  ;;  %v469_v43 = vsub.s32 32, %v468_v15  ;;  %v471_v28 = vshll.u32 %v5170_v32, %v468_v15  ;;  %v474_v16 = vshll.u32 %v5165_v34, %v468_v15 }
  0x73   :  { %v331_v44 = vsel %vm248_vm9, %v330_v13, %v329_v18  ;;  %v477_v26 = vshll.u32 %v5163_v36, %v468_v15  ;;  %v480_v55 = vshll.u32 %v5158_v38, %v468_v15  ;;  %vm345_vm9 = vcmp.eq.s32.totalorder %v3876_v23, 2 }
  0x74   :  { %v334_v45 = vsel %vm3786_vm2, %v3530_v2, %v331_v44  ;;  %v416_v17 = vsub.s32 0, %v3883_v39  ;;  %v472_v50 = vshrl.u32 %v5165_v34, %v469_v43  ;;  %v475_v51 = vshrl.u32 %v5163_v36, %v469_v43 }
  0x75   :  { %3391 = vcosq.f32 %v334_v45  ;;  %v478_v59 = vshrl.u32 %v5158_v38, %v469_v43  ;;  %v481_v37 = vshrl.u32 %v5193_v40, %v469_v43  ;;  %vm342_vm12 = vcmp.eq.s32.totalorder %v3876_v23, 0 }
  0x76   :  { %3393 = vsinq.f32 %v334_v45  ;;  %v3206_v53 = vmin.u32 %v416_v17, %v3883_v39  ;;  %v473_v9 = vor.u32 %v472_v50, %v471_v28  ;;  %v476_v33 = vor.u32 %v475_v51, %v474_v16 }
  0x77   :  { %v470_v63 = vshrl.u32 %v5170_v32, %v469_v43  ;;  %v479_v19 = vor.u32 %v478_v59, %v477_v26  ;;  %v3213_v6 = vadd.s32 4294967169, %v562_v25  ;;  %vm341_vm13 = vcmp.lt.s32.totalorder %v3876_v23, 2 }
  0x78   :  { %v418_v12 = vclz %v3206_v53  ;;  %vm3912_vm0 = vcmp.le.f32.partialorder %v350_v10, 0.7853982  ;;  %v482_v8 = vor.u32 %v481_v37, %v480_v55  ;;  %v483_v42 = vshll.u32 %v5193_v40, %v468_v15 }
  0x79   :  { %v484_v14 = vshrl.u32 %v5175_v48, %v469_v43  ;;  %vm486_vm1 = vcmp.lt.s32.totalorder %v467_v31, 1  ;;  %vm338_vm14 = vweird.f32 %v3530_v2  ;;  %v437_v11 = vsel %vm352_vm11, %v436_v3, %v412_v29 }
  0x7a   :  { %v3207_v18 = vadd.s32 4294967294, %v418_v12  ;;  %vm488_vm2 = vcmp.lt.s32.totalorder %v467_v31, 3  ;;  %vm489_vm4 = vcmp.lt.s32.totalorder %v467_v31, 4  ;;  %vm487_vm5 = vcmp.lt.s32.totalorder %v467_v31, 2 }
  0x7b   :  { %v485_v20 = vor.u32 %v484_v14, %v483_v42  ;;  %v491_v10 = vsel %vm489_vm4, %v479_v19, 2102212464  ;;  %v494_v5 = vsel %vm486_vm1, %v473_v9, %v476_v33  ;;  %v490_v13 = vsel %vm486_vm1, %v470_v63, %v473_v9 }
  0x7c   :  { %vm3208_vm6 = vcmp.lt.s32.totalorder %v3207_v18, 0  ;;  %v492_v15 = vsel %vm488_vm2, %v476_v33, %v491_v10  ;;  %v495_v43 = vsel %vm489_vm4, %v482_v8, 920167782  ;;  %v498_v16 = vsel %vm486_vm1, %v476_v33, %v479_v19 }
  0x7d   :  { %v421_v44 = vsel %vm3208_vm6, 0, %v3207_v18  ;;  %v496_v28 = vsel %vm488_vm2, %v479_v19, %v495_v43  ;;  %v499_v25 = vsel %vm489_vm4, %v485_v20, 1326507024  ;;  %v493_v51 = vsel %vm487_vm5, %v490_v13, %v492_v15 }
  0x7e   :  { %v422_v29 = vsub.s32 32, %v421_v44  ;;  %v423_v45 = vshll.u32 %v3883_v39, %v421_v44  ;;  %v426_v17 = vsub.s32 4294967266, %v421_v44  ;;  %v497_v26 = vsel %vm487_vm5, %v494_v5, %v496_v28 }
  0x7f   :  { %v3928_v50 = vpop.eup %3391  ;;  %v500_v59 = vsel %vm488_vm2, %v482_v8, %v499_v25  ;;  %v3933_v53 = vmul.u32.u64.low %v3885_v27, %v497_v26  ;;  %v3934_v3 = vmul.u32.u64.high %v3885_v27, %v497_v26, %v3933_v53  ;;  %v568_v8 = vadd.s32 1, %v3213_v6 }
  0x80   :  { %v3937_v55 = vpop.eup %3393  ;;  %v5149_v9 = vxor.u32 2147483648, %v3928_v50  ;;  %v424_v39 = vshrl.u32 %v3881_v35, %v422_v29  ;;  %v427_v33 = vadd.s32 127, %v426_v17  ;;  %v501_v37 = vsel %vm487_vm5, %v498_v16, %v500_v59 }
  0x81   :  { %v5150_v12 = vxor.u32 2147483648, %v3937_v55  ;;  %v3944_v63 = vmul.u32.u64.low %v3885_v27, %v501_v37  ;;  %v3945_v19 = vmul.u32.u64.high %v3885_v27, %v501_v37, %v3944_v63  ;;  %v3954_v35 = vsel %vm3912_vm0, 0, %v437_v11 }
  0x82   :  { %v347_v42 = vsel %vm345_vm9, %v5149_v9, %v3937_v55  ;;  %v425_v14 = vor.u32 %v424_v39, %v423_v45  ;;  %v428_v18 = vshll.u32 %v427_v33, 23  ;;  %v509_v6 = vmul.u32 %v3885_v27, %v493_v51 }
  0x83   :  { %v344_v31 = vsel %vm342_vm12, %v3928_v50, %v5150_v12  ;;  %v512_v20 = vadd.s32 1, %v3934_v3  ;;  %vm569_vm7 = vcmp.gt.s32.totalorder %v568_v8, 0  ;;  %vm511_vm8 = vc.u32 %v3945_v19, %v3933_v53 }
  0x84   :  { %v348_v10 = vsel %vm341_vm13, %v344_v31, %v347_v42  ;;  %v429_v5 = vor.u32 4788187, %v428_v18  ;;  %v432_v13 = vcvt.s32.f32 %v425_v14  ;;  %v570_v15 = vsel %vm569_vm7, %v568_v8, 0 }
  0x85   :  { %v349_v11 = vsel %vm338_vm14, nan, %v348_v10  ;;  %v3969_v43 = vshrl.u32 %v570_v15, 5  ;;  %v513_v27 = vsel %vm511_vm8, %v512_v20, %v3934_v3  ;;  %v572_v28 = vand.u32 31, %v570_v15 }
  0x86   :  { %3145 = vst [vmem:[#allocation5 + $0x2] sm:$0x1] %v349_v11  ;;  %v430_v44 = vand.u32 2147483647, %v429_v5  ;;  %v443_v16 = vadd.s32 3, %v3954_v35  ;;  %v514_v23 = vadd.s32 %v513_v27, %v509_v6  ;;  %v566_v25 = vor.u32 8388608, %v3905_v57 }
  0x87   :  { %v3975_v29 = vmul.f32 4.0, %v3526_v0  ;;  %v573_v17 = vsub.s32 32, %v572_v28  ;;  %v575_v26 = vshll.u32 %v5170_v32, %v572_v28  ;;  %v578_v51 = vshll.u32 %v5165_v34, %v572_v28 }
  0x88   :  { %v433_v45 = vmul.f32 %v432_v13, %v430_v44  ;;  %v515_v59 = vadd.s32 536870912, %v514_v23  ;;  %v581_v39 = vshll.u32 %v5163_v36, %v572_v28  ;;  %v584_v3 = vshll.u32 %v5158_v38, %v572_v28 }
  0x89   :  { %5240 = vst [vmem:[#allocation9_spill] sm:$0xff] %v3975_v29  ;;  %vm590_vm10 = vcmp.lt.s32.totalorder %v3969_v43, 1  ;;  %v576_v37 = vshrl.u32 %v5165_v34, %v573_v17  ;;  %v579_v57 = vshrl.u32 %v5163_v36, %v573_v17  ;;  %v587_v63 = vshll.u32 %v5193_v40, %v572_v28 }
  0x8a   :  { %v434_v33 = vxor.u32 2147483648, %v433_v45  ;;  %v516_v8 = vshrl.u32 %v515_v59, 30  ;;  %v582_v42 = vshrl.u32 %v5158_v38, %v573_v17  ;;  %v585_v14 = vshrl.u32 %v5193_v40, %v573_v17 }
  0x8b   :  { %v588_v18 = vshrl.u32 %v5175_v48, %v573_v17  ;;  %v577_v6 = vor.u32 %v576_v37, %v575_v26  ;;  %v580_v20 = vor.u32 %v579_v57, %v578_v51  ;;  %vm592_vm9 = vcmp.lt.s32.totalorder %v3969_v43, 3 }
  0x8c   :  { %v435_v31 = vsel %vm352_vm11, %v434_v33, %v433_v45  ;;  %v517_v5 = vshll.u32 %v516_v8, 30  ;;  %v583_v13 = vor.u32 %v582_v42, %v581_v39  ;;  %vm593_vm12 = vcmp.lt.s32.totalorder %v3969_v43, 4 }
  0x8d   :  { %v438_v10 = vsel %vm3912_vm0, %v3546_v22, %v435_v31  ;;  %v574_v15 = vshrl.u32 %v5170_v32, %v573_v17  ;;  %v586_v11 = vor.u32 %v585_v14, %v584_v3  ;;  %v589_v44 = vor.u32 %v588_v18, %v587_v63 }
  0x8e   :  { %3395 = vcosq.f32 %v438_v10  ;;  %v3996_v27 = vsub.s32 %v514_v23, %v517_v5  ;;  %vm591_vm11 = vcmp.lt.s32.totalorder %v3969_v43, 2  ;;  %v665_v28 = vand.u32 2139095040, %v3975_v29 }
  0x8f   :  { %3397 = vsinq.f32 %v438_v10  ;;  %v595_v30 = vsel %vm593_vm12, %v583_v13, 2102212464  ;;  %v598_v45 = vsel %vm590_vm10, %v577_v6, %v580_v20  ;;  %v599_v26 = vsel %vm593_vm12, %v586_v11, 920167782 }
  0x90   :  { %v606_v51 = vshll.u32 %v566_v25, 8  ;;  %v444_v17 = vand.u32 3, %v443_v16  ;;  %v520_v59 = vsub.s32 0, %v3996_v27  ;;  %v540_v39 = vsub.s32 4, %v516_v8 }
  0x91   :  { %v600_v23 = vsel %vm592_vm9, %v583_v13, %v599_v26  ;;  %v594_v3 = vsel %vm590_vm10, %v574_v15, %v577_v6  ;;  %v602_v37 = vsel %vm590_vm10, %v580_v20, %v583_v13  ;;  %v603_v57 = vsel %vm593_vm12, %v589_v44, 1326507024 }
  0x92   :  { %v601_v33 = vsel %vm591_vm11, %v598_v45, %v600_v23  ;;  %v3210_v16 = vmin.u32 %v520_v59, %v3996_v27  ;;  %v596_v25 = vsel %vm592_vm9, %v580_v20, %v595_v30  ;;  %v604_v63 = vsel %vm592_vm9, %v586_v11, %v603_v57 }
  0x93   :  { %v666_v42 = vshrl.u32 %v665_v28, 23  ;;  %vm456_vm13 = vcmp.lt.s32.totalorder %v3769_v62, 0  ;;  %v605_v14 = vsel %vm591_vm11, %v602_v37, %v604_v63  ;;  %vm442_vm0 = vweird.f32 %v3546_v22 }
  0x94   :  { %v4025_v18 = vmul.u32.u64.low %v606_v51, %v601_v33  ;;  %v4026_v31 = vmul.u32.u64.high %v606_v51, %v601_v33, %v4025_v18  ;;  %v522_v6 = vclz %v3210_v16  ;;  %v541_v10 = vsel %vm456_vm13, %v540_v39, %v516_v8 }
  0x95   :  { %v597_v20 = vsel %vm591_vm11, %v594_v3, %v596_v25  ;;  %v4034_v5 = vmul.u32.u64.low %v606_v51, %v605_v14  ;;  %v4035_v13 = vmul.u32.u64.high %v606_v51, %v605_v14, %v4034_v5  ;;  %v3217_v15 = vadd.s32 4294967169, %v666_v42 }
  0x96   :  { %vm446_vm1 = vcmp.eq.s32.totalorder %v444_v17, 0  ;;  %vm4039_vm2 = vcmp.le.f32.partialorder %v454_v60, 0.7853982  ;;  %v3211_v44 = vadd.s32 4294967294, %v522_v6  ;;  %v662_v28 = vand.u32 2147483647, %v3975_v29 }
  0x97   :  { %vm449_vm4 = vcmp.eq.s32.totalorder %v444_v17, 2  ;;  %v510_v43 = vadd.s32 %v3933_v53, %v3945_v19  ;;  %v616_v8 = vadd.s32 1, %v4026_v31  ;;  %v672_v45 = vadd.s32 1, %v3217_v15 }
  0x98   :  { %v4044_v30 = vpop.eup %3395  ;;  %vm3212_vm5 = vcmp.lt.s32.totalorder %v3211_v44, 0  ;;  %v4054_v60 = vsel %vm4039_vm2, 0, %v541_v10  ;;  %v613_v39 = vmul.u32 %v606_v51, %v597_v20  ;;  %vm445_vm6 = vcmp.lt.s32.totalorder %v444_v17, 2 }
  0x99   :  { %v4049_v26 = vpop.eup %3397  ;;  %v5147_v59 = vxor.u32 2147483648, %v4044_v30  ;;  %v525_v3 = vsel %vm3212_vm5, 0, %v3211_v44  ;;  %vm615_vm7 = vc.u32 %v4035_v13, %v4025_v18  ;;  %v547_v57 = vadd.s32 3, %v4054_v60 }
  0x9a   :  { %v5148_v23 = vxor.u32 2147483648, %v4049_v26  ;;  %v526_v19 = vsub.s32 32, %v525_v3  ;;  %v527_v33 = vshll.u32 %v3996_v27, %v525_v3  ;;  %v530_v37 = vsub.s32 4294967266, %v525_v3 }
  0x9b   :  { %v451_v53 = vsel %vm449_vm4, %v5147_v59, %v4049_v26  ;;  %v617_v16 = vsel %vm615_vm7, %v616_v8, %v4026_v31  ;;  %vm673_vm8 = vcmp.gt.s32.totalorder %v672_v45, 0  ;;  %v669_v27 = vand.u32 8388607, %v662_v28 }
  0x9c   :  { %v448_v51 = vsel %vm446_vm1, %v4044_v30, %v5148_v23  ;;  %v528_v63 = vshrl.u32 %v510_v43, %v526_v19  ;;  %v531_v42 = vadd.s32 127, %v530_v37  ;;  %v618_v14 = vadd.s32 %v617_v16, %v613_v39 }
  0x9d   :  { %v452_v25 = vsel %vm445_vm6, %v448_v51, %v451_v53  ;;  %v674_v10 = vsel %vm673_vm8, %v672_v45, 0  ;;  %v4074_v20 = vmul.f32 4.0, %v3528_v1  ;;  %v4076_v43 = vand.u32 3, %v547_v57 }
  0x9e   :  { %v453_v6 = vsel %vm442_vm0, nan, %v452_v25  ;;  %v529_v17 = vor.u32 %v528_v63, %v527_v33  ;;  %v532_v5 = vshll.u32 %v531_v42, 23  ;;  %v619_v15 = vadd.s32 536870912, %v618_v14 }
  0x9f   :  { %5243 = vst [vmem:[#allocation10_spill] sm:$0xff] %v4074_v20  ;;  %3146 = vst [vmem:[#allocation5 + $0x3] sm:$0x1] %v453_v6  ;;  %v676_v31 = vand.u32 31, %v674_v10  ;;  %v670_v3 = vor.u32 8388608, %v669_v27  ;;  %v675_v53 = vshrl.u32 %v674_v10, 5  ;;  %vm5230_vm5 = vweird.f32 %v3769_v62 }
  0xa0   :  { %v533_v44 = vor.u32 4788187, %v532_v5  ;;  %v536_v8 = vcvt.s32.f32 %v529_v17  ;;  %v620_v39 = vshrl.u32 %v619_v15, 30  ;;  %v769_v37 = vand.u32 2139095040, %v4074_v20 }
  0xa1   :  { %v677_v19 = vsub.s32 32, %v676_v31  ;;  %v679_v16 = vshll.u32 %v5170_v32, %v676_v31  ;;  %v682_v25 = vshll.u32 %v5165_v34, %v676_v31  ;;  %v685_v42 = vshll.u32 %v5163_v36, %v676_v31 }
  0xa2   :  { %v534_v51 = vand.u32 2147483647, %v533_v44  ;;  %v621_v45 = vshll.u32 %v620_v39, 30  ;;  %vm560_vm10 = vcmp.lt.s32.totalorder %v3863_v58, 0  ;;  %v688_v10 = vshll.u32 %v5158_v38, %v676_v31 }
  0xa3   :  { %v680_v33 = vshrl.u32 %v5165_v34, %v677_v19  ;;  %v683_v63 = vshrl.u32 %v5163_v36, %v677_v19  ;;  %v686_v57 = vshrl.u32 %v5158_v38, %v677_v19  ;;  %v689_v17 = vshrl.u32 %v5193_v40, %v677_v19 }
  0xa4   :  { %v537_v6 = vmul.f32 %v536_v8, %v534_v51  ;;  %v4086_v27 = vsub.s32 %v618_v14, %v621_v45  ;;  %vm694_vm9 = vcmp.lt.s32.totalorder %v675_v53, 1  ;;  %v4090_v5 = vshll.u32 %v670_v3, 8 }
  0xa5   :  { %v5157_v15 = vand.u32 2147483647, %v4074_v20  ;;  %v770_v44 = vshrl.u32 %v769_v37, 23  ;;  %v678_v9 = vshrl.u32 %v5170_v32, %v677_v19  ;;  %v681_v8 = vor.u32 %v680_v33, %v679_v16 }
  0xa6   :  { %v538_v59 = vxor.u32 2147483648, %v537_v6  ;;  %v624_v23 = vsub.s32 0, %v4086_v27  ;;  %v684_v51 = vor.u32 %v683_v63, %v682_v25  ;;  %v687_v12 = vor.u32 %v686_v57, %v685_v42 }
  0xa7   :  { %v691_v14 = vshll.u32 %v5193_v40, %v676_v31  ;;  %v692_v45 = vshrl.u32 %v5175_v48, %v677_v19  ;;  %v690_v52 = vor.u32 %v689_v17, %v688_v10  ;;  %vm697_vm12 = vcmp.lt.s32.totalorder %v675_v53, 4 }
  0xa8   :  { %v539_v49 = vsel %vm456_vm13, %v538_v59, %v537_v6  ;;  %v3214_v3 = vmin.u32 %v624_v23, %v4086_v27  ;;  %vm4105_vm11 = vcmp.le.f32.partialorder %v558_v54, 0.7853982  ;;  %v644_v31 = vsub.s32 4, %v620_v39 }
  0xa9   :  { %v542_v37 = vsel %vm4039_vm2, %v3769_v62, %v539_v49  ;;  %v693_v25 = vor.u32 %v692_v45, %v691_v14  ;;  %v699_v19 = vsel %vm697_vm12, %v687_v12, 2102212464  ;;  %vm695_vm13 = vcmp.lt.s32.totalorder %v675_v53, 2 }
  0xaa   :  { %3399 = vcosq.f32 %v542_v37  ;;  %v626_v59 = vclz %v3214_v3  ;;  %vm696_vm1 = vcmp.lt.s32.totalorder %v675_v53, 3  ;;  %v698_v23 = vsel %vm694_vm9, %v678_v9, %v681_v8 }
  0xab   :  { %3401 = vsinq.f32 %v542_v37  ;;  %v700_v11 = vsel %vm696_vm1, %v684_v51, %v699_v19  ;;  %v702_v49 = vsel %vm694_vm9, %v681_v8, %v684_v51  ;;  %v614_v54 = vadd.s32 %v4025_v18, %v4035_v13 }
  0xac   :  { %v3215_v33 = vadd.s32 4294967294, %v626_v59  ;;  %v703_v63 = vsel %vm697_vm12, %v690_v52, 920167782  ;;  %v706_v42 = vsel %vm694_vm9, %v684_v51, %v687_v12  ;;  %v645_v57 = vsel %vm560_vm10, %v644_v31, %v620_v39 }
  0xad   :  { %v704_v6 = vsel %vm696_vm1, %v687_v12, %v703_v63  ;;  %v707_v10 = vsel %vm697_vm12, %v693_v25, 1326507024  ;;  %v3221_v9 = vadd.s32 4294967169, %v770_v44  ;;  %vm549_vm2 = vcmp.lt.s32.totalorder %v4076_v43, 2 }
  0xae   :  { %vm3216_vm4 = vcmp.lt.s32.totalorder %v3215_v33, 0  ;;  %v701_v17 = vsel %vm695_vm13, %v698_v23, %v700_v11  ;;  %v705_v18 = vsel %vm695_vm13, %v702_v49, %v704_v6  ;;  %v708_v13 = vsel %vm696_vm1, %v690_v52, %v707_v10 }
  0xaf   :  { %v629_v8 = vsel %vm3216_vm4, 0, %v3215_v33  ;;  %v709_v51 = vsel %vm695_vm13, %v706_v42, %v708_v13  ;;  %v4128_v39 = vmul.u32.u64.low %v4090_v5, %v705_v18  ;;  %v4129_v12 = vmul.u32.u64.high %v4090_v5, %v705_v18, %v4128_v39 }
  0xb0   :  { %v630_v44 = vsub.s32 32, %v629_v8  ;;  %v631_v14 = vshll.u32 %v4086_v27, %v629_v8  ;;  %v634_v45 = vsub.s32 4294967266, %v629_v8  ;;  %v776_v3 = vadd.s32 1, %v3221_v9 }
  0xb1   :  { %vm550_vm6 = vcmp.eq.s32.totalorder %v4076_v43, 0  ;;  %v4135_v37 = vmul.u32.u64.low %v4090_v5, %v709_v51  ;;  %v4136_v52 = vmul.u32.u64.high %v4090_v5, %v709_v51, %v4135_v37  ;;  %v773_v53 = vand.u32 8388607, %v5157_v15 }
  0xb2   :  { %v632_v31 = vshrl.u32 %v614_v54, %v630_v44  ;;  %v635_v25 = vadd.s32 127, %v634_v45  ;;  %v4142_v19 = vsel %vm4105_vm11, 0, %v645_v57  ;;  %vm777_vm7 = vcmp.gt.s32.totalorder %v776_v3, 0 }
  0xb3   :  { %5246 = vst [vmem:[#allocation11_spill] sm:$0xff] %v4142_v19  ;;  %v717_v27 = vmul.u32 %v4090_v5, %v701_v17  ;;  %v720_v59 = vadd.s32 1, %v4129_v12  ;;  %v778_v23 = vsel %vm777_vm7, %v776_v3, 0  ;;  %v4147_v11 = vmul.f32 4.0, %v3530_v2 }
  0xb4   :  { %v4149_v49 = vpop.eup %3399  ;;  %vm553_vm8 = vcmp.eq.s32.totalorder %v4076_v43, 2  ;;  %v633_v33 = vor.u32 %v632_v31, %v631_v14  ;;  %v636_v54 = vshll.u32 %v635_v25, 23  ;;  %v780_v63 = vand.u32 31, %v778_v23 }
  0xb5   :  { %5247 = vst [vmem:[#allocation12_spill] sm:$0xff] %v4147_v11  ;;  %v4152_v42 = vpop.eup %3401  ;;  %v5153_v57 = vxor.u32 2147483648, %v4149_v49  ;;  %v651_v6 = vadd.s32 3, %v4142_v19  ;;  %vm719_vm9 = vc.u32 %v4136_v52, %v4128_v39  ;;  %v774_v5 = vor.u32 8388608, %v773_v53 }
  0xb6   :  { %v5154_v10 = vxor.u32 2147483648, %v4152_v42  ;;  %v637_v9 = vor.u32 4788187, %v636_v54  ;;  %v640_v17 = vcvt.s32.f32 %v633_v33  ;;  %v721_v18 = vsel %vm719_vm9, %v720_v59, %v4129_v12 }
  0xb7   :  { %v555_v13 = vsel %vm553_vm8, %v5153_v57, %v4152_v42  ;;  %v722_v8 = vadd.s32 %v721_v18, %v717_v27  ;;  %v781_v51 = vsub.s32 32, %v780_v63  ;;  %v873_v44 = vand.u32 2139095040, %v4147_v11 }
  0xb8   :  { %v552_v14 = vsel %vm550_vm6, %v4149_v49, %v5154_v10  ;;  %v638_v45 = vand.u32 2147483647, %v637_v9  ;;  %v4169_v3 = vshrl.u32 %v778_v23, 5  ;;  %v783_v37 = vshll.u32 %v5170_v32, %v780_v63 }
  0xb9   :  { %v556_v12 = vsel %vm549_vm2, %v552_v14, %v555_v13  ;;  %v723_v53 = vadd.s32 536870912, %v722_v8  ;;  %v786_v31 = vshll.u32 %v5165_v34, %v780_v63  ;;  %v789_v25 = vshll.u32 %v5163_v36, %v780_v63 }
  0xba   :  { %v557_v27 = vsel %vm5230_vm5, nan, %v556_v12  ;;  %v641_v59 = vmul.f32 %v640_v17, %v638_v45  ;;  %v784_v33 = vshrl.u32 %v5165_v34, %v781_v51  ;;  %v787_v54 = vshrl.u32 %v5163_v36, %v781_v51 }
  0xbb   :  { %3147 = vst [vmem:[#allocation5 + $0x4] sm:$0x1] %v557_v27  ;;  %v724_v23 = vshrl.u32 %v723_v53, 30  ;;  %v790_v9 = vshrl.u32 %v5158_v38, %v781_v51  ;;  %v792_v43 = vshll.u32 %v5158_v38, %v780_v63  ;;  %v793_v18 = vshrl.u32 %v5193_v40, %v781_v51 }
  0xbc   :  { %v642_v13 = vxor.u32 2147483648, %v641_v59  ;;  %v4183_v14 = vand.u32 3, %v651_v6  ;;  %v795_v57 = vshll.u32 %v5193_v40, %v780_v63  ;;  %v4186_v10 = vshll.u32 %v774_v5, 8 }
  0xbd   :  { %v725_v17 = vshll.u32 %v724_v23, 30  ;;  %v782_v45 = vshrl.u32 %v5170_v32, %v781_v51  ;;  %v796_v12 = vshrl.u32 %v5175_v48, %v781_v51  ;;  %v874_v27 = vshrl.u32 %v873_v44, 23 }
  0xbe   :  { %v643_v53 = vsel %vm560_vm10, %v642_v13, %v641_v59  ;;  %v785_v4 = vor.u32 %v784_v33, %v783_v37  ;;  %v788_v7 = vor.u32 %v787_v54, %v786_v31  ;;  %v794_v15 = vor.u32 %v793_v18, %v792_v43 }
  0xbf   :  { %v646_v6 = vsel %vm4105_vm11, %v3863_v58, %v643_v53  ;;  %v4195_v38 = vsub.s32 %v722_v8, %v725_v17  ;;  %v791_v63 = vor.u32 %v790_v9, %v789_v25  ;;  %vm798_vm12 = vcmp.lt.s32.totalorder %v4169_v3, 1 }
  0xc0   :  { %3403 = vcosq.f32 %v646_v6  ;;  %v797_v5 = vor.u32 %v796_v12, %v795_v57  ;;  %vm800_vm13 = vcmp.lt.s32.totalorder %v4169_v3, 3  ;;  %vm801_vm1 = vcmp.lt.s32.totalorder %v4169_v3, 4 }
  0xc1   :  { %3405 = vsinq.f32 %v646_v6  ;;  %v728_v51 = vsub.s32 0, %v4195_v38  ;;  %vm799_vm10 = vcmp.lt.s32.totalorder %v4169_v3, 2  ;;  %v803_v44 = vsel %vm801_vm1, %v791_v63, 2102212464 }
  0xc2   :  { %v748_v37 = vsub.s32 4, %v724_v23  ;;  %v806_v16 = vsel %vm798_vm12, %v785_v4, %v788_v7  ;;  %v807_v8 = vsel %vm801_vm1, %v794_v15, 920167782  ;;  %v5162_v31 = vand.u32 2147483647, %v4147_v11 }
  0xc3   :  { %v3218_v25 = vmin.u32 %v728_v51, %v4195_v38  ;;  %v802_v57 = vsel %vm798_vm12, %v782_v45, %v785_v4  ;;  %v804_v59 = vsel %vm800_vm13, %v788_v7, %v803_v44  ;;  %v808_v33 = vsel %vm800_vm13, %v791_v63, %v807_v8 }
  0xc4   :  { %v809_v54 = vsel %vm799_vm10, %v806_v16, %v808_v33  ;;  %v810_v9 = vsel %vm798_vm12, %v788_v7, %v791_v63  ;;  %v811_v43 = vsel %vm801_vm1, %v797_v5, 1326507024  ;;  %v3225_v18 = vadd.s32 4294967169, %v874_v27 }
  0xc5   :  { %vm5228_vm11 = vweird.f32 %v3863_v58  ;;  %vm654_vm2 = vcmp.eq.s32.totalorder %v4183_v14, 0  ;;  %vm4220_vm4 = vcmp.le.f32.partialorder %v662_v28, 0.7853982  ;;  %vm664_vm6 = vcmp.lt.s32.totalorder %v3975_v29, 0 }
  0xc6   :  { %v730_v13 = vclz %v3218_v25  ;;  %v749_v17 = vsel %vm664_vm6, %v748_v37, %v724_v23  ;;  %v812_v7 = vsel %vm800_vm13, %v794_v15, %v811_v43  ;;  %v805_v28 = vsel %vm799_vm10, %v802_v57, %v804_v59 }
  0xc7   :  { %v4230_v45 = vmul.u32.u64.low %v4186_v10, %v809_v54  ;;  %v4231_v12 = vmul.u32.u64.high %v4186_v10, %v809_v54, %v4230_v45  ;;  %v813_v53 = vsel %vm799_vm10, %v810_v9, %v812_v7  ;;  %v880_v6 = vadd.s32 1, %v3225_v18 }
  0xc8   :  { %v3219_v27 = vadd.s32 4294967294, %v730_v13  ;;  %vm657_vm7 = vcmp.eq.s32.totalorder %v4183_v14, 2  ;;  %v4240_v23 = vmul.u32.u64.low %v4186_v10, %v813_v53  ;;  %v4241_v63 = vmul.u32.u64.high %v4186_v10, %v813_v53, %v4240_v23 }
  0xc9   :  { %v877_v15 = vand.u32 8388607, %v5162_v31  ;;  %v718_v5 = vadd.s32 %v4128_v39, %v4136_v52  ;;  %v4249_v51 = vsel %vm4220_vm4, 0, %v749_v17  ;;  %vm881_vm9 = vcmp.gt.s32.totalorder %v880_v6, 0 }
  0xca   :  { %vm3220_vm8 = vcmp.lt.s32.totalorder %v3219_v27, 0  ;;  %5250 = vst [vmem:[#allocation13_spill] sm:$0xff] %v4249_v51  ;;  %v4251_v3 = vpop.eup %3403  ;;  %v821_v37 = vmul.u32 %v4186_v10, %v805_v28  ;;  %v824_v16 = vadd.s32 1, %v4231_v12  ;;  %v882_v8 = vsel %vm881_vm9, %v880_v6, 0 }
  0xcb   :  { %5251 = vst [vmem:[#allocation14_spill] sm:$0xff] %v4251_v3  ;;  %v733_v44 = vsel %vm3220_vm8, 0, %v3219_v27  ;;  %v4255_v25 = vpop.eup %3405  ;;  %v5160_v57 = vxor.u32 2147483648, %v4251_v3  ;;  %vm653_vm12 = vcmp.lt.s32.totalorder %v4183_v14, 2  ;;  %vm823_vm13 = vc.u32 %v4241_v63, %v4230_v45 }
  0xcc   :  { %5252 = vst [vmem:[#allocation15_spill] sm:$0xff] %v4255_v25  ;;  %v734_v59 = vsub.s32 32, %v733_v44  ;;  %v735_v39 = vshll.u32 %v4195_v38, %v733_v44  ;;  %v738_v52 = vsub.s32 4294967266, %v733_v44  ;;  %v5161_v33 = vxor.u32 2147483648, %v4255_v25 }
  0xcd   :  { %v4264_v10 = vmul.f32 8.0, %v3526_v0  ;;  %v659_v54 = vsel %vm657_vm7, %v5160_v57, %v4255_v25  ;;  %v825_v38 = vsel %vm823_vm13, %v824_v16, %v4231_v12  ;;  %v4278_v13 = vadd.s32 3, %v4249_v51 }
  0xce   :  { %v736_v9 = vshrl.u32 %v718_v5, %v734_v59  ;;  %v739_v43 = vadd.s32 127, %v738_v52  ;;  %v656_v18 = vsel %vm654_vm2, %v4251_v3, %v5161_v33  ;;  %v826_v17 = vadd.s32 %v825_v38, %v821_v37 }
  0xcf   :  { %5253 = vst [vmem:[#allocation16_spill] sm:$0xff] %v4264_v10  ;;  %v884_v7 = vand.u32 31, %v882_v8  ;;  %v660_v27 = vsel %vm653_vm12, %v656_v18, %v659_v54  ;;  %v878_v6 = vor.u32 8388608, %v877_v15  ;;  %v883_v12 = vshrl.u32 %v882_v8, 5 }
  0xd0   :  { %v737_v28 = vor.u32 %v736_v9, %v735_v39  ;;  %v740_v53 = vshll.u32 %v739_v43, 23  ;;  %v661_v23 = vsel %vm5228_vm11, nan, %v660_v27  ;;  %v827_v5 = vadd.s32 536870912, %v826_v17 }
  0xd1   :  { %v885_v44 = vsub.s32 32, %v884_v7  ;;  %3148 = vst [vmem:[#allocation5 + $0x5] sm:$0x1] %v661_v23  ;;  %v887_v14 = vshll.u32 %v5170_v32, %v884_v7  ;;  %v890_v52 = vshll.u32 %v5165_v34, %v884_v7  ;;  %v893_v15 = vshll.u32 %v5163_v36, %v884_v7 }
  0xd2   :  { %v741_v16 = vor.u32 4788187, %v740_v53  ;;  %v744_v59 = vcvt.s32.f32 %v737_v28  ;;  %v828_v57 = vshrl.u32 %v827_v5, 30  ;;  %v5254_v9 = vmov 2102212464  }
  0xd3   :  { %v888_v37 = vshrl.u32 %v5165_v34, %v885_v44  ;;  %v891_v39 = vshrl.u32 %v5163_v36, %v885_v44  ;;  %v894_v43 = vshrl.u32 %v5254_v9, %v885_v44  ;;  %v896_v8 = vshll.u32 %v5254_v9, %v884_v7 }
  0xd4   :  { %v742_v54 = vand.u32 2147483647, %v741_v16  ;;  %v897_v38 = vshrl.u32 %v5193_v40, %v885_v44  ;;  %v829_v18 = vshll.u32 %v828_v57, 30  ;;  %v886_v27 = vshrl.u32 %v5170_v32, %v885_v44 }
  0xd5   :  { %v4291_v28 = vshll.u32 %v878_v6, 8  ;;  %v977_v53 = vand.u32 2139095040, %v4264_v10  ;;  %v889_v5 = vor.u32 %v888_v37, %v887_v14  ;;  %v899_v31 = vshll.u32 %v5193_v40, %v884_v7 }
  0xd6   :  { %v745_v23 = vmul.f32 %v744_v59, %v742_v54  ;;  %v898_v33 = vor.u32 %v897_v38, %v896_v8  ;;  %v4295_v36 = vsub.s32 %v826_v17, %v829_v18  ;;  %v892_v16 = vor.u32 %v891_v39, %v890_v52 }
  0xd7   :  { %v895_v34 = vor.u32 %v894_v43, %v893_v15  ;;  %v900_v58 = vshrl.u32 %v5175_v48, %v885_v44  ;;  %vm902_vm1 = vcmp.lt.s32.totalorder %v883_v12, 1  ;;  %vm903_vm10 = vcmp.lt.s32.totalorder %v883_v12, 2 }
  0xd8   :  { %v746_v3 = vxor.u32 2147483648, %v745_v23  ;;  %vm905_vm2 = vcmp.lt.s32.totalorder %v883_v12, 4  ;;  %v832_v6 = vsub.s32 0, %v4295_v36  ;;  %vm904_vm7 = vcmp.lt.s32.totalorder %v883_v12, 3 }
  0xd9   :  { %v901_v32 = vor.u32 %v900_v58, %v899_v31  ;;  %v907_v59 = vsel %vm905_vm2, %v895_v34, 2102212464  ;;  %v852_v7 = vsub.s32 4, %v828_v57  ;;  %v906_v17 = vsel %vm902_vm1, %v886_v27, %v889_v5 }
  0xda   :  { %v747_v14 = vsel %vm664_vm6, %v746_v3, %v745_v23  ;;  %v911_v52 = vsel %vm905_vm2, %v898_v33, 920167782  ;;  %v3222_v37 = vmin.u32 %v832_v6, %v4295_v36  ;;  %v908_v39 = vsel %vm904_vm7, %v892_v16, %v907_v59 }
  0xdb   :  { %v750_v44 = vsel %vm4220_vm4, %v3975_v29, %v747_v14  ;;  %v910_v58 = vsel %vm902_vm1, %v889_v5, %v892_v16  ;;  %v912_v31 = vsel %vm904_vm7, %v895_v34, %v911_v52  ;;  %v914_v3 = vsel %vm902_vm1, %v892_v16, %v895_v34 }
  0xdc   :  { %3407 = vcosq.f32 %v750_v44  ;;  %v915_v15 = vsel %vm905_vm2, %v901_v32, 1326507024  ;;  %vm768_vm6 = vcmp.lt.s32.totalorder %v4074_v20, 0  ;;  %v834_v54 = vclz %v3222_v37 }
  0xdd   :  { %3409 = vsinq.f32 %v750_v44  ;;  %v853_v4 = vsel %vm768_vm6, %v852_v7, %v828_v57  ;;  %v909_v43 = vsel %vm903_vm10, %v906_v17, %v908_v39  ;;  %v913_v8 = vsel %vm903_vm10, %v910_v58, %v912_v31 }
  0xde   :  { %v916_v38 = vsel %vm904_vm7, %v898_v33, %v915_v15  ;;  %v3223_v18 = vadd.s32 4294967294, %v834_v54  ;;  %v4321_v34 = vmul.u32.u64.low %v4291_v28, %v913_v8  ;;  %v4322_v23 = vmul.u32.u64.high %v4291_v28, %v913_v8, %v4321_v34 }
  0xdf   :  { %v917_v27 = vsel %vm903_vm10, %v914_v3, %v916_v38  ;;  %v756_v32 = vand.u32 3, %v4278_v13  ;;  %v978_v57 = vshrl.u32 %v977_v53, 23  ;;  %v5255_v6 = vand.u32 2147483647, %v4074_v20 }
  0xe0   :  { %v4327_v5 = vmul.u32.u64.low %v4291_v28, %v917_v27  ;;  %v4328_v16 = vmul.u32.u64.high %v4291_v28, %v917_v27, %v4327_v5  ;;  %v822_v33 = vadd.s32 %v4230_v45, %v4241_v63  ;;  %vm3224_vm8 = vcmp.lt.s32.totalorder %v3223_v18, 0 }
  0xe1   :  { %vm4332_vm4 = vcmp.le.f32.partialorder %v5255_v6, 0.7853982  ;;  %v837_v12 = vsel %vm3224_vm8, 0, %v3223_v18  ;;  %v925_v13 = vmul.u32 %v4291_v28, %v909_v43  ;;  %v3229_v7 = vadd.s32 4294967169, %v978_v57 }
  0xe2   :  { %v4340_v14 = vsel %vm4332_vm4, 0, %v853_v4  ;;  %v838_v17 = vsub.s32 32, %v837_v12  ;;  %v839_v53 = vshll.u32 %v4295_v36, %v837_v12  ;;  %v842_v52 = vsub.s32 4294967266, %v837_v12 }
  0xe3   :  { %5258 = vst [vmem:[#allocation17_spill] sm:$0xff] %v4340_v14  ;;  %v928_v44 = vadd.s32 1, %v4322_v23  ;;  %vm758_vm9 = vcmp.eq.s32.totalorder %v756_v32, 0  ;;  %vm927_vm12 = vc.u32 %v4328_v16, %v4321_v34  ;;  %v984_v45 = vadd.s32 1, %v3229_v7 }
  0xe4   :  { %vm761_vm13 = vcmp.eq.s32.totalorder %v756_v32, 2  ;;  %v840_v63 = vshrl.u32 %v822_v33, %v838_v17  ;;  %v843_v37 = vadd.s32 127, %v842_v52  ;;  %v859_v28 = vadd.s32 3, %v4340_v14 }
  0xe5   :  { %v929_v39 = vsel %vm927_vm12, %v928_v44, %v4322_v23  ;;  %v5174_v36 = vand.u32 2147483647, %v4264_v10  ;;  %vm985_vm1 = vcmp.gt.s32.totalorder %v984_v45, 0  ;;  %vm757_vm10 = vcmp.lt.s32.totalorder %v756_v32, 2 }
  0xe6   :  { %v4348_v58 = vpop.eup %3407  ;;  %v930_v31 = vadd.s32 %v929_v39, %v925_v13  ;;  %v841_v54 = vor.u32 %v840_v63, %v839_v53  ;;  %v844_v4 = vshll.u32 %v843_v37, 23  ;;  %v986_v43 = vsel %vm985_vm1, %v984_v45, 0 }
  0xe7   :  { %5259 = vst [vmem:[#allocation18_spill] sm:$0xff] %v4348_v58  ;;  %v4352_v3 = vpop.eup %3409  ;;  %v5172_v15 = vxor.u32 2147483648, %v4348_v58  ;;  %v988_v18 = vand.u32 31, %v986_v43  ;;  %vm5225_vm2 = vweird.f32 %v3975_v29  ;;  %v4365_v6 = vand.u32 3, %v859_v28 }
  0xe8   :  { %5260 = vst [vmem:[#allocation19_spill] sm:$0xff] %v4352_v3  ;;  %v5173_v8 = vxor.u32 2147483648, %v4352_v3  ;;  %v931_v38 = vadd.s32 536870912, %v930_v31  ;;  %v845_v23 = vor.u32 4788187, %v844_v4  ;;  %v848_v5 = vcvt.s32.f32 %v841_v54 }
  0xe9   :  { %v763_v27 = vsel %vm761_vm13, %v5172_v15, %v4352_v3  ;;  %v989_v12 = vsub.s32 32, %v988_v18  ;;  %v981_v17 = vand.u32 8388607, %v5174_v36  ;;  %v5261_v53 = vmov 683565275  }
  0xea   :  { %v760_v57 = vsel %vm758_vm9, %v4348_v58, %v5173_v8  ;;  %v4367_v33 = vshrl.u32 %v931_v38, 30  ;;  %v846_v7 = vand.u32 2147483647, %v845_v23  ;;  %v991_v52 = vshll.u32 %v5261_v53, %v988_v18 }
  0xeb   :  { %v764_v13 = vsel %vm757_vm10, %v760_v57, %v763_v27  ;;  %v5262_v63 = vmov 2475754826   ;;  %v5263_v37 = vmov 2131351028   ;;  %v998_v38 = vshrl.u32 %v5254_v9, %v989_v12 }
  0xec   :  { %v765_v44 = vsel %vm5225_vm2, nan, %v764_v13  ;;  %v933_v45 = vshll.u32 %v4367_v33, 30  ;;  %v994_v32 = vshll.u32 %v5262_v63, %v988_v18  ;;  %v997_v39 = vshll.u32 %v5263_v37, %v988_v18 }
  0xed   :  { %3149 = vst [vmem:[#allocation5 + $0x6] sm:$0x1] %v765_v44  ;;  %v849_v28 = vmul.f32 %v848_v5, %v846_v7  ;;  %v992_v54 = vshrl.u32 %v5262_v63, %v989_v12  ;;  %v995_v4 = vshrl.u32 %v5263_v37, %v989_v12  ;;  %v987_v23 = vshrl.u32 %v986_v43, 5 }
  0xee   :  { %v4380_v27 = vsub.s32 %v930_v31, %v933_v45  ;;  %v1000_v57 = vshll.u32 %v5254_v9, %v988_v18  ;;  %v1001_v13 = vshrl.u32 %v5193_v40, %v989_v12  ;;  %v926_v8 = vadd.s32 %v4321_v34, %v4328_v16 }
  0xef   :  { %v850_v15 = vxor.u32 2147483648, %v849_v28  ;;  %v982_v36 = vor.u32 8388608, %v981_v17  ;;  %v4387_v5 = vmul.f32 8.0, %v3528_v1  ;;  %v990_v44 = vshrl.u32 %v5261_v53, %v989_v12 }
  0xf0   :  { %v936_v7 = vsub.s32 0, %v4380_v27  ;;  %v993_v48 = vor.u32 %v992_v54, %v991_v52  ;;  %v996_v31 = vor.u32 %v995_v4, %v994_v32  ;;  %v999_v45 = vor.u32 %v998_v38, %v997_v39 }
  0xf1   :  { %5264 = vst [vmem:[#allocation20_spill] sm:$0xff] %v4387_v5  ;;  %v851_v43 = vsel %vm768_vm6, %v850_v15, %v849_v28  ;;  %v1003_v29 = vshll.u32 %v5193_v40, %v988_v18  ;;  %v5265_v58 = vmov 1326507024   ;;  %v1002_v17 = vor.u32 %v1001_v13, %v1000_v57 }
  0xf2   :  { %v1004_v3 = vshrl.u32 %v5265_v58, %v989_v12  ;;  %v854_v34 = vsel %vm4332_vm4, %v4074_v20, %v851_v43  ;;  %v3226_v16 = vmin.u32 %v936_v7, %v4380_v27  ;;  %vm1006_vm7 = vcmp.lt.s32.totalorder %v987_v23, 1 }
  0xf3   :  { %3411 = vcosq.f32 %v854_v34  ;;  %vm872_vm8 = vcmp.lt.s32.totalorder %v4147_v11, 0  ;;  %vm1009_vm9 = vcmp.lt.s32.totalorder %v987_v23, 4  ;;  %v1081_v15 = vand.u32 2139095040, %v4387_v5 }
  0xf4   :  { %v1005_v52 = vor.u32 %v1004_v3, %v1003_v29  ;;  %3413 = vsinq.f32 %v854_v34  ;;  %v938_v32 = vclz %v3226_v16  ;;  %vm1008_vm6 = vcmp.lt.s32.totalorder %v987_v23, 3 }
  0xf5   :  { %v1022_v18 = vshll.u32 %v982_v36, 8  ;;  %vm1007_vm12 = vcmp.lt.s32.totalorder %v987_v23, 2  ;;  %v1010_v12 = vsel %vm1006_vm7, %v990_v44, %v993_v48  ;;  %v1011_v59 = vsel %vm1009_vm9, %v999_v45, 2102212464 }
  0xf6   :  { %v1014_v39 = vsel %vm1006_vm7, %v993_v48, %v996_v31  ;;  %v5266_v28 = vand.u32 2147483647, %v4147_v11  ;;  %v3227_v29 = vadd.s32 4294967294, %v938_v32  ;;  %v1012_v3 = vsel %vm1008_vm6, %v996_v31, %v1011_v59 }
  0xf7   :  { %v1015_v4 = vsel %vm1009_vm9, %v1002_v17, 920167782  ;;  %v1018_v36 = vsel %vm1006_vm7, %v996_v31, %v999_v45  ;;  %v956_v38 = vsub.s32 4, %v4367_v33  ;;  %v1019_v13 = vsel %vm1009_vm9, %v1005_v52, 1326507024 }
  0xf8   :  { %vm4406_vm4 = vcmp.le.f32.partialorder %v5266_v28, 0.7853982  ;;  %v1016_v57 = vsel %vm1008_vm6, %v999_v45, %v1015_v4  ;;  %v1082_v48 = vshrl.u32 %v1081_v15, 23  ;;  %vm5224_vm13 = vweird.f32 %v4074_v20 }
  0xf9   :  { %vm3228_vm1 = vcmp.lt.s32.totalorder %v3227_v29, 0  ;;  %v1013_v7 = vsel %vm1007_vm12, %v1010_v12, %v1012_v3  ;;  %v1017_v44 = vsel %vm1007_vm12, %v1014_v39, %v1016_v57  ;;  %v1020_v43 = vsel %vm1008_vm6, %v1002_v17, %v1019_v13 }
  0xfa   :  { %v941_v34 = vsel %vm3228_vm1, 0, %v3227_v29  ;;  %v1021_v16 = vsel %vm1007_vm12, %v1018_v36, %v1020_v43  ;;  %v4421_v31 = vmul.u32.u64.low %v1022_v18, %v1017_v44  ;;  %v4422_v32 = vmul.u32.u64.high %v1022_v18, %v1017_v44, %v4421_v31 }
  0xfb   :  { %v942_v45 = vsub.s32 32, %v941_v34  ;;  %v943_v52 = vshll.u32 %v4380_v27, %v941_v34  ;;  %v946_v15 = vsub.s32 4294967266, %v941_v34  ;;  %v3233_v59 = vadd.s32 4294967169, %v1082_v48 }
  0xfc   :  { %vm861_vm10 = vcmp.lt.s32.totalorder %v4365_v6, 2  ;;  %vm862_vm7 = vcmp.eq.s32.totalorder %v4365_v6, 0  ;;  %v4428_v12 = vmul.u32.u64.low %v1022_v18, %v1021_v16  ;;  %v4429_v39 = vmul.u32.u64.high %v1022_v18, %v1021_v16, %v4428_v12 }
  0xfd   :  { %v944_v17 = vshrl.u32 %v926_v8, %v942_v45  ;;  %v947_v28 = vadd.s32 127, %v946_v15  ;;  %v957_v23 = vsel %vm872_vm8, %v956_v38, %v4367_v33  ;;  %v1088_v29 = vadd.s32 1, %v3233_v59  ;;  %v4434_v3 = vpop.eup %3411 }
  0xfe   :  { %5269 = vst [vmem:[#allocation21_spill] sm:$0xff] %v4434_v3  ;;  %vm865_vm9 = vcmp.eq.s32.totalorder %v4365_v6, 2  ;;  %v1029_v27 = vmul.u32 %v1022_v18, %v1013_v7  ;;  %v1032_v4 = vadd.s32 1, %v4422_v32  ;;  %v5184_v36 = vand.u32 2147483647, %v4387_v5  ;;  %v4439_v57 = vpop.eup %3413 }
  0xff   :  { %5270 = vst [vmem:[#allocation22_spill] sm:$0xff] %v4439_v57  ;;  %v5182_v13 = vxor.u32 2147483648, %v4434_v3  ;;  %v945_v8 = vor.u32 %v944_v17, %v943_v52  ;;  %v948_v48 = vshll.u32 %v947_v28, 23  ;;  %vm1089_vm6 = vcmp.gt.s32.totalorder %v1088_v29, 0 }
 0x100   :  { %v5183_v44 = vxor.u32 2147483648, %v4439_v57  ;;  %v4445_v33 = vsel %vm4406_vm4, 0, %v957_v23  ;;  %vm1031_vm12 = vc.u32 %v4429_v39, %v4421_v31  ;;  %v1090_v18 = vsel %vm1089_vm6, %v1088_v29, 0 }
 0x101   :  { %5271 = vst [vmem:[#allocation23_spill] sm:$0xff] %v4445_v33  ;;  %v867_v38 = vsel %vm865_vm9, %v5182_v13, %v4439_v57  ;;  %v949_v7 = vor.u32 4788187, %v948_v48  ;;  %v952_v43 = vcvt.s32.f32 %v945_v8  ;;  %v1033_v34 = vsel %vm1031_vm12, %v1032_v4, %v4422_v32 }
 0x102   :  { %v864_v16 = vsel %vm862_vm7, %v4434_v3, %v5183_v44  ;;  %v1034_v45 = vadd.s32 %v1033_v34, %v1029_v27  ;;  %v1092_v52 = vand.u32 31, %v1090_v18  ;;  %v4459_v15 = vmul.f32 8.0, %v3530_v2 }
 0x103   :  { %v868_v59 = vsel %vm861_vm10, %v864_v16, %v867_v38  ;;  %v950_v12 = vand.u32 2147483647, %v949_v7  ;;  %v963_v17 = vadd.s32 3, %v4445_v33  ;;  %v1085_v32 = vand.u32 8388607, %v5184_v36 }
 0x104   :  { %v869_v28 = vsel %vm5224_vm13, nan, %v868_v59  ;;  %v1035_v23 = vadd.s32 536870912, %v1034_v45  ;;  %v1093_v29 = vsub.s32 32, %v1092_v52  ;;  %v1095_v27 = vshll.u32 %v5261_v53, %v1092_v52 }
 0x105   :  { %3150 = vst [vmem:[#allocation5 + $0x7] sm:$0x1] %v869_v28  ;;  %v953_v4 = vmul.f32 %v952_v43, %v950_v12  ;;  %v1091_v8 = vshrl.u32 %v1090_v18, 5  ;;  %v1098_v48 = vshll.u32 %v5262_v63, %v1092_v52  ;;  %v1101_v6 = vshll.u32 %v5263_v37, %v1092_v52 }
 0x106   :  { %v4471_v38 = vshrl.u32 %v1035_v23, 30  ;;  %v1096_v7 = vshrl.u32 %v5262_v63, %v1093_v29  ;;  %v1099_v34 = vshrl.u32 %v5263_v37, %v1093_v29  ;;  %v1104_v16 = vshll.u32 %v5254_v9, %v1092_v52 }
 0x107   :  { %v954_v59 = vxor.u32 2147483648, %v953_v4  ;;  %v1102_v13 = vshrl.u32 %v5254_v9, %v1093_v29  ;;  %v1105_v44 = vshrl.u32 %v5193_v40, %v1093_v29  ;;  %v1107_v43 = vshll.u32 %v5193_v40, %v1092_v52 }
 0x108   :  { %v1037_v18 = vshll.u32 %v4471_v38, 30  ;;  %v1086_v12 = vor.u32 8388608, %v1085_v32  ;;  %v1094_v28 = vshrl.u32 %v5261_v53, %v1093_v29  ;;  %v1097_v23 = vor.u32 %v1096_v7, %v1095_v27 }
 0x109   :  { %v955_v36 = vsel %vm872_vm8, %v954_v59, %v953_v4  ;;  %v1100_v20 = vor.u32 %v1099_v34, %v1098_v48  ;;  %v1103_v3 = vor.u32 %v1102_v13, %v1101_v6  ;;  %v1108_v57 = vshrl.u32 %v5265_v58, %v1093_v29 }
 0x10a   :  { %v958_v33 = vsel %vm4406_vm4, %v4147_v11, %v955_v36  ;;  %v4487_v25 = vsub.s32 %v1034_v45, %v1037_v18  ;;  %v1106_v52 = vor.u32 %v1105_v44, %v1104_v16  ;;  %vm1110_vm1 = vcmp.lt.s32.totalorder %v1091_v8, 1 }
 0x10b   :  { %3415 = vcosq.f32 %v958_v33  ;;  %v4489_v32 = vand.u32 3, %v963_v17  ;;  %v1109_v40 = vor.u32 %v1108_v57, %v1107_v43  ;;  %v1185_v27 = vand.u32 2139095040, %v4459_v15 }
 0x10c   :  { %3417 = vsinq.f32 %v958_v33  ;;  %v1040_v4 = vsub.s32 0, %v4487_v25  ;;  %vm1112_vm8 = vcmp.lt.s32.totalorder %v1091_v8, 3  ;;  %v1126_v13 = vshll.u32 %v1086_v12, 8 }
 0x10d   :  { %vm1111_vm10 = vcmp.lt.s32.totalorder %v1091_v8, 2  ;;  %vm1113_vm7 = vcmp.lt.s32.totalorder %v1091_v8, 4  ;;  %v1114_v54 = vsel %vm1110_vm1, %v1094_v28, %v1097_v23  ;;  %v1118_v36 = vsel %vm1110_vm1, %v1097_v23, %v1100_v20 }
 0x10e   :  { %v3230_v44 = vmin.u32 %v1040_v4, %v4487_v25  ;;  %v1115_v45 = vsel %vm1113_vm7, %v1103_v3, 2102212464  ;;  %v1119_v29 = vsel %vm1113_vm7, %v1106_v52, 920167782  ;;  %v1122_v17 = vsel %vm1110_vm1, %v1100_v20, %v1103_v3 }
 0x10f   :  { %v1116_v57 = vsel %vm1112_vm8, %v1100_v20, %v1115_v45  ;;  %v1120_v33 = vsel %vm1112_vm8, %v1103_v3, %v1119_v29  ;;  %v1123_v48 = vsel %vm1113_vm7, %v1109_v40, 1326507024  ;;  %v1186_v6 = vshrl.u32 %v1185_v27, 23 }
 0x110   :  { %vm5212_vm4 = vweird.f32 %v4147_v11  ;;  %vm976_vm9 = vcmp.lt.s32.totalorder %v4264_v10, 0  ;;  %v1042_v7 = vclz %v3230_v44  ;;  %v1060_v34 = vsub.s32 4, %v4471_v38 }
 0x111   :  { %v1117_v16 = vsel %vm1111_vm10, %v1114_v54, %v1116_v57  ;;  %v1121_v59 = vsel %vm1111_vm10, %v1118_v36, %v1120_v33  ;;  %v1124_v43 = vsel %vm1112_vm8, %v1106_v52, %v1123_v48  ;;  %v3237_v18 = vadd.s32 4294967169, %v1186_v6 }
 0x112   :  { %v5272_v20 = vand.u32 2147483647, %v4264_v10  ;;  %v3231_v40 = vadd.s32 4294967294, %v1042_v7  ;;  %v1125_v12 = vsel %vm1111_vm10, %v1122_v17, %v1124_v43  ;;  %vm965_vm12 = vcmp.lt.s32.totalorder %v4489_v32, 2 }
 0x113   :  { %v4512_v28 = vmul.u32.u64.low %v1126_v13, %v1121_v59  ;;  %v4513_v23 = vmul.u32.u64.high %v1126_v13, %v1121_v59, %v4512_v28  ;;  %v4517_v27 = vmul.u32.u64.low %v1126_v13, %v1125_v12  ;;  %v4518_v4 = vmul.u32.u64.high %v1126_v13, %v1125_v12, %v4517_v27 }
 0x114   :  { %vm4507_vm6 = vcmp.le.f32.partialorder %v5272_v20, 0.7853982  ;;  %v5197_v52 = vand.u32 2147483647, %v4459_v15  ;;  %vm966_vm1 = vcmp.eq.s32.totalorder %v4489_v32, 0  ;;  %v1030_v54 = vadd.s32 %v4421_v31, %v4429_v39 }
 0x115   :  { %vm3232_vm8 = vcmp.lt.s32.totalorder %v3231_v40, 0  ;;  %v1192_v36 = vadd.s32 1, %v3237_v18  ;;  %v4524_v8 = vpop.eup %3415  ;;  %vm969_vm10 = vcmp.eq.s32.totalorder %v4489_v32, 2  ;;  %v1061_v45 = vsel %vm976_vm9, %v1060_v34, %v4471_v38 }
 0x116   :  { %5275 = vst [vmem:[#allocation24_spill] sm:$0xff] %v4524_v8  ;;  %v1045_v44 = vsel %vm3232_vm8, 0, %v3231_v40  ;;  %v1133_v29 = vmul.u32 %v1126_v13, %v1117_v16  ;;  %v4530_v17 = vpop.eup %3417  ;;  %v5195_v57 = vxor.u32 2147483648, %v4524_v8  ;;  %vm1135_vm7 = vc.u32 %v4518_v4, %v4512_v28 }
 0x117   :  { %5276 = vst [vmem:[#allocation25_spill] sm:$0xff] %v4530_v17  ;;  %v1046_v33 = vsub.s32 32, %v1045_v44  ;;  %v1047_v48 = vshll.u32 %v4487_v25, %v1045_v44  ;;  %v1050_v31 = vsub.s32 4294967266, %v1045_v44  ;;  %v5196_v39 = vxor.u32 2147483648, %v4530_v17 }
 0x118   :  { %v1136_v6 = vadd.s32 1, %v4513_v23  ;;  %v1189_v7 = vand.u32 8388607, %v5197_v52  ;;  %v971_v38 = vsel %vm969_vm10, %v5195_v57, %v4530_v17  ;;  %vm1193_vm8 = vcmp.gt.s32.totalorder %v1192_v36, 0 }
 0x119   :  { %v1048_v13 = vshrl.u32 %v1030_v54, %v1046_v33  ;;  %v1051_v34 = vadd.s32 127, %v1050_v31  ;;  %v968_v25 = vsel %vm966_vm1, %v4524_v8, %v5196_v39  ;;  %v1194_v59 = vsel %vm1193_vm8, %v1192_v36, 0 }
 0x11a   :  { %v1137_v16 = vsel %vm1135_vm7, %v1136_v6, %v4513_v23  ;;  %v4550_v43 = vmul.f32 16.0, %v3526_v0  ;;  %v972_v18 = vsel %vm965_vm12, %v968_v25, %v971_v38  ;;  %v4558_v54 = vsel %vm4507_vm6, 0, %v1061_v45 }
 0x11b   :  { %v1049_v20 = vor.u32 %v1048_v13, %v1047_v48  ;;  %v1052_v40 = vshll.u32 %v1051_v34, 23  ;;  %v1138_v12 = vadd.s32 %v1137_v16, %v1133_v29  ;;  %v973_v27 = vsel %vm5212_vm4, nan, %v972_v18  ;;  %5277 = vst [vmem:[#allocation26_spill] sm:$0xff] %v4558_v54 }
 0x11c   :  { %v1196_v44 = vand.u32 31, %v1194_v59  ;;  %3151 = vst [vmem:[#allocation5 + $0x8] sm:$0x1] %v973_v27  ;;  %v1190_v31 = vor.u32 8388608, %v1189_v7  ;;  %v1195_v6 = vshrl.u32 %v1194_v59, 5  ;;  %v1289_v48 = vand.u32 2139095040, %v4550_v43 }
 0x11d   :  { %v1053_v23 = vor.u32 4788187, %v1052_v40  ;;  %v1056_v36 = vcvt.s32.f32 %v1049_v20  ;;  %v1139_v33 = vadd.s32 536870912, %v1138_v12  ;;  %v5278_v20 = vmov 920167782  }
 0x11e   :  { %v1197_v57 = vsub.s32 32, %v1196_v44  ;;  %v1199_v32 = vshll.u32 %v5261_v53, %v1196_v44  ;;  %v1202_v13 = vshll.u32 %v5262_v63, %v1196_v44  ;;  %v1205_v45 = vshll.u32 %v5263_v37, %v1196_v44 }
 0x11f   :  { %v1054_v29 = vand.u32 2147483647, %v1053_v23  ;;  %v4562_v38 = vshrl.u32 %v1139_v33, 30  ;;  %v1208_v7 = vshll.u32 %v5254_v9, %v1196_v44  ;;  %v1211_v27 = vshll.u32 %v5278_v20, %v1196_v44 }
 0x120   :  { %v1200_v34 = vshrl.u32 %v5262_v63, %v1197_v57  ;;  %v1203_v25 = vshrl.u32 %v5263_v37, %v1197_v57  ;;  %v1206_v16 = vshrl.u32 %v5254_v9, %v1197_v57  ;;  %v1209_v40 = vshrl.u32 %v5278_v20, %v1197_v57 }
 0x121   :  { %v1057_v59 = vmul.f32 %v1056_v36, %v1054_v29  ;;  %v1141_v18 = vshll.u32 %v4562_v38, 30  ;;  %v1067_v23 = vadd.s32 3, %v4558_v54  ;;  %v1212_v33 = vshrl.u32 %v5265_v58, %v1197_v57 }
 0x122   :  { %v4575_v39 = vshll.u32 %v1190_v31, 8  ;;  %v1198_v8 = vshrl.u32 %v5261_v53, %v1197_v57  ;;  %v1290_v17 = vshrl.u32 %v1289_v48, 23  ;;  %v1201_v14 = vor.u32 %v1200_v34, %v1199_v32 }
 0x123   :  { %v1058_v52 = vxor.u32 2147483648, %v1057_v59  ;;  %v4577_v11 = vsub.s32 %v1138_v12, %v1141_v18  ;;  %v1204_v36 = vor.u32 %v1203_v25, %v1202_v13  ;;  %v1207_v29 = vor.u32 %v1206_v16, %v1205_v45 }
 0x124   :  { %v1210_v51 = vor.u32 %v1209_v40, %v1208_v7  ;;  %v1213_v54 = vor.u32 %v1212_v33, %v1211_v27  ;;  %vm1214_vm12 = vcmp.lt.s32.totalorder %v1195_v6, 1  ;;  %vm1215_vm1 = vcmp.lt.s32.totalorder %v1195_v6, 2 }
 0x125   :  { %v1059_v19 = vsel %vm976_vm9, %v1058_v52, %v1057_v59  ;;  %v1144_v44 = vsub.s32 0, %v4577_v11  ;;  %vm1216_vm10 = vcmp.lt.s32.totalorder %v1195_v6, 3  ;;  %vm1217_vm7 = vcmp.lt.s32.totalorder %v1195_v6, 4 }
 0x126   :  { %v1062_v31 = vsel %vm4507_vm6, %v4264_v10, %v1059_v19  ;;  %v1218_v12 = vsel %vm1214_vm12, %v1198_v8, %v1201_v14  ;;  %v1219_v32 = vsel %vm1217_vm7, %v1207_v29, 2102212464  ;;  %v1222_v48 = vsel %vm1214_vm12, %v1201_v14, %v1204_v36 }
 0x127   :  { %3419 = vcosq.f32 %v1062_v31  ;;  %v3234_v57 = vmin.u32 %v1144_v44, %v4577_v11  ;;  %v1220_v52 = vsel %vm1216_vm10, %v1204_v36, %v1219_v32  ;;  %v1223_v13 = vsel %vm1217_vm7, %v1210_v51, 920167782 }
 0x128   :  { %3421 = vsinq.f32 %v1062_v31  ;;  %v1068_v45 = vand.u32 3, %v1067_v23  ;;  %vm1080_vm9 = vcmp.lt.s32.totalorder %v4387_v5, 0  ;;  %v1226_v19 = vsel %vm1214_vm12, %v1204_v36, %v1207_v29 }
 0x129   :  { %v1146_v3 = vclz %v3234_v57  ;;  %v1134_v34 = vadd.s32 %v4512_v28, %v4518_v4  ;;  %v1224_v25 = vsel %vm1216_vm10, %v1207_v29, %v1223_v13  ;;  %v1227_v16 = vsel %vm1217_vm7, %v1213_v54, 1326507024 }
 0x12a   :  { %v3241_v8 = vadd.s32 4294967169, %v1290_v17  ;;  %v5279_v7 = vand.u32 2147483647, %v4387_v5  ;;  %v1221_v18 = vsel %vm1215_vm1, %v1218_v12, %v1220_v52  ;;  %v1225_v40 = vsel %vm1215_vm1, %v1222_v48, %v1224_v25 }
 0x12b   :  { %v3235_v14 = vadd.s32 4294967294, %v1146_v3  ;;  %v1228_v27 = vsel %vm1216_vm10, %v1210_v51, %v1227_v16  ;;  %v1164_v23 = vsub.s32 4, %v4562_v38  ;;  %vm1069_vm12 = vcmp.lt.s32.totalorder %v1068_v45, 2 }
 0x12c   :  { %vm4597_vm6 = vcmp.le.f32.partialorder %v5279_v7, 0.7853982  ;;  %v1229_v28 = vsel %vm1215_vm1, %v1226_v19, %v1228_v27  ;;  %v4607_v4 = vmul.u32.u64.low %v4575_v39, %v1225_v40  ;;  %v4608_v17 = vmul.u32.u64.high %v4575_v39, %v1225_v40, %v4607_v4 }
 0x12d   :  { %vm3236_vm8 = vcmp.lt.s32.totalorder %v3235_v14, 0  ;;  %v4612_v54 = vmul.u32.u64.low %v4575_v39, %v1229_v28  ;;  %v4613_v33 = vmul.u32.u64.high %v4575_v39, %v1229_v28, %v4612_v54  ;;  %v1296_v36 = vadd.s32 1, %v3241_v8 }
 0x12e   :  { %v1149_v29 = vsel %vm3236_vm8, 0, %v3235_v14  ;;  %v1237_v44 = vmul.u32 %v4575_v39, %v1221_v18  ;;  %v5209_v51 = vand.u32 2147483647, %v4550_v43  ;;  %vm1070_vm10 = vcmp.eq.s32.totalorder %v1068_v45, 0 }
 0x12f   :  { %v1150_v31 = vsub.s32 32, %v1149_v29  ;;  %v1151_v6 = vshll.u32 %v4577_v11, %v1149_v29  ;;  %v1154_v57 = vsub.s32 4294967266, %v1149_v29  ;;  %vm1297_vm1 = vcmp.gt.s32.totalorder %v1296_v36, 0 }
 0x130   :  { %vm1073_vm7 = vcmp.eq.s32.totalorder %v1068_v45, 2  ;;  %v1240_v12 = vadd.s32 1, %v4608_v17  ;;  %v1298_v32 = vsel %vm1297_vm1, %v1296_v36, 0  ;;  %v1165_v39 = vsel %vm1080_vm9, %v1164_v23, %v4562_v38 }
 0x131   :  { %v4619_v52 = vpop.eup %3419  ;;  %v1152_v48 = vshrl.u32 %v1134_v34, %v1150_v31  ;;  %v1155_v13 = vadd.s32 127, %v1154_v57  ;;  %vm1239_vm8 = vc.u32 %v4613_v33, %v4607_v4  ;;  %v1293_v25 = vand.u32 8388607, %v5209_v51 }
 0x132   :  { %5282 = vst [vmem:[#allocation27_spill] sm:$0xff] %v4619_v52  ;;  %v4626_v3 = vpop.eup %3421  ;;  %v5207_v11 = vxor.u32 2147483648, %v4619_v52  ;;  %v1241_v19 = vsel %vm1239_vm8, %v1240_v12, %v4608_v17  ;;  %v1300_v16 = vand.u32 31, %v1298_v32  ;;  %vm5211_vm1 = vweird.f32 %v4264_v10 }
 0x133   :  { %v5208_v34 = vxor.u32 2147483648, %v4626_v3  ;;  %v1153_v8 = vor.u32 %v1152_v48, %v1151_v6  ;;  %v1156_v7 = vshll.u32 %v1155_v13, 23  ;;  %v1242_v14 = vadd.s32 %v1241_v19, %v1237_v44 }
 0x134   :  { %v1075_v38 = vsel %vm1073_vm7, %v5207_v11, %v4626_v3  ;;  %v4640_v18 = vsel %vm4597_vm6, 0, %v1165_v39  ;;  %v1301_v40 = vsub.s32 32, %v1300_v16  ;;  %v1294_v36 = vor.u32 8388608, %v1293_v25 }
 0x135   :  { %v1072_v27 = vsel %vm1070_vm10, %v4619_v52, %v5208_v34  ;;  %v1157_v23 = vor.u32 4788187, %v1156_v7  ;;  %v1160_v28 = vcvt.s32.f32 %v1153_v8  ;;  %v1243_v17 = vadd.s32 536870912, %v1242_v14 }
 0x136   :  { %v1076_v54 = vsel %vm1069_vm12, %v1072_v27, %v1075_v38  ;;  %v1303_v29 = vshll.u32 %v5261_v53, %v1300_v16  ;;  %v1306_v44 = vshll.u32 %v5262_v63, %v1300_v16  ;;  %v1304_v12 = vshrl.u32 %v5262_v63, %v1301_v40 }
 0x137   :  { %v1077_v31 = vsel %vm5211_vm1, nan, %v1076_v54  ;;  %v1158_v6 = vand.u32 2147483647, %v1157_v23  ;;  %v1244_v57 = vshrl.u32 %v1243_v17, 30  ;;  %v1307_v48 = vshrl.u32 %v5263_v37, %v1301_v40 }
 0x138   :  { %3152 = vst [vmem:[#allocation5 + $0x9] sm:$0x1] %v1077_v31  ;;  %v1309_v13 = vshll.u32 %v5263_v37, %v1300_v16  ;;  %v1310_v45 = vshrl.u32 %v5254_v9, %v1301_v40  ;;  %v1312_v39 = vshll.u32 %v5254_v9, %v1300_v16  ;;  %v1299_v8 = vshrl.u32 %v1298_v32, 5 }
 0x139   :  { %v1161_v19 = vmul.f32 %v1160_v28, %v1158_v6  ;;  %v1245_v25 = vshll.u32 %v1244_v57, 30  ;;  %v1313_v7 = vshrl.u32 %v5278_v20, %v1301_v40  ;;  %v1171_v38 = vadd.s32 3, %v4640_v18 }
 0x13a   :  { %v1315_v27 = vshll.u32 %v5278_v20, %v1300_v16  ;;  %v1316_v23 = vshrl.u32 %v5265_v58, %v1301_v40  ;;  %v4661_v17 = vmul.f32 16.0, %v3528_v1  ;;  %v1302_v11 = vshrl.u32 %v5261_v53, %v1301_v40 }
 0x13b   :  { %v1162_v54 = vxor.u32 2147483648, %v1161_v19  ;;  %v4663_v31 = vsub.s32 %v1242_v14, %v1245_v25  ;;  %v4666_v34 = vshll.u32 %v1294_v36, 8  ;;  %vm1184_vm12 = vcmp.lt.s32.totalorder %v4459_v15, 0 }
 0x13c   :  { %v1305_v32 = vor.u32 %v1304_v12, %v1303_v29  ;;  %v1308_v28 = vor.u32 %v1307_v48, %v1306_v44  ;;  %v1311_v6 = vor.u32 %v1310_v45, %v1309_v13  ;;  %v1314_v51 = vor.u32 %v1313_v7, %v1312_v39 }
 0x13d   :  { %v1163_v16 = vsel %vm1080_vm9, %v1162_v54, %v1161_v19  ;;  %v1248_v10 = vsub.s32 0, %v4663_v31  ;;  %vm1318_vm10 = vcmp.lt.s32.totalorder %v1299_v8, 1  ;;  %vm1321_vm7 = vcmp.lt.s32.totalorder %v1299_v8, 4 }
 0x13e   :  { %v1166_v14 = vsel %vm4597_vm6, %v4387_v5, %v1163_v16  ;;  %v1317_v40 = vor.u32 %v1316_v23, %v1315_v27  ;;  %vm1319_vm8 = vcmp.lt.s32.totalorder %v1299_v8, 2  ;;  %v1323_v36 = vsel %vm1321_vm7, %v1311_v6, 2102212464 }
 0x13f   :  { %3423 = vcosq.f32 %v1166_v14  ;;  %v5283_v29 = vand.u32 2147483647, %v4459_v15  ;;  %v3238_v12 = vmin.u32 %v1248_v10, %v4663_v31  ;;  %vm1320_vm9 = vcmp.lt.s32.totalorder %v1299_v8, 3 }
 0x140   :  { %v1322_v48 = vsel %vm1318_vm10, %v1302_v11, %v1305_v32  ;;  %3425 = vsinq.f32 %v1166_v14  ;;  %v1324_v59 = vsel %vm1320_vm9, %v1308_v28, %v1323_v36  ;;  %v1326_v13 = vsel %vm1318_vm10, %v1305_v32, %v1308_v28 }
 0x141   :  { %vm4678_vm1 = vcmp.le.f32.partialorder %v5283_v29, 0.7853982  ;;  %v1327_v45 = vsel %vm1321_vm7, %v1314_v51, 920167782  ;;  %v1172_v39 = vand.u32 3, %v1171_v38  ;;  %v1250_v19 = vclz %v3238_v12 }
 0x142   :  { %v1268_v25 = vsub.s32 4, %v1244_v57  ;;  %v1330_v7 = vsel %vm1318_vm10, %v1308_v28, %v1311_v6  ;;  %v1238_v27 = vadd.s32 %v4607_v4, %v4613_v33  ;;  %v1328_v10 = vsel %vm1320_vm9, %v1311_v6, %v1327_v45 }
 0x143   :  { %v1331_v23 = vsel %vm1321_vm7, %v1317_v40, 1326507024  ;;  %v5215_v11 = vand.u32 2147483647, %v4661_v17  ;;  %v3239_v54 = vadd.s32 4294967294, %v1250_v19  ;;  %v1325_v16 = vsel %vm1319_vm8, %v1322_v48, %v1324_v59 }
 0x144   :  { %v1329_v32 = vsel %vm1319_vm8, %v1326_v13, %v1328_v10  ;;  %v1332_v38 = vsel %vm1320_vm9, %v1314_v51, %v1331_v23  ;;  %v1393_v4 = vand.u32 2139095040, %v4661_v17  ;;  %v1269_v33 = vsel %vm1184_vm12, %v1268_v25, %v1244_v57 }
 0x145   :  { %v1333_v14 = vsel %vm1319_vm8, %v1330_v7, %v1332_v38  ;;  %v4698_v28 = vmul.u32.u64.low %v4666_v34, %v1329_v32  ;;  %v4699_v36 = vmul.u32.u64.high %v4666_v34, %v1329_v32, %v4698_v28  ;;  %vm3240_vm6 = vcmp.lt.s32.totalorder %v3239_v54, 0 }
 0x146   :  { %v4705_v6 = vmul.u32.u64.low %v4666_v34, %v1333_v14  ;;  %v4706_v40 = vmul.u32.u64.high %v4666_v34, %v1333_v14, %v4705_v6  ;;  %vm1173_vm10 = vcmp.lt.s32.totalorder %v1172_v39, 2  ;;  %vm1174_vm7 = vcmp.eq.s32.totalorder %v1172_v39, 0 }
 0x147   :  { %v1253_v29 = vsel %vm3240_vm6, 0, %v3239_v54  ;;  %v1394_v51 = vshrl.u32 %v1393_v4, 23  ;;  %v1341_v59 = vmul.u32 %v4666_v34, %v1325_v16  ;;  %vm1177_vm8 = vcmp.eq.s32.totalorder %v1172_v39, 2 }
 0x148   :  { %v1254_v8 = vsub.s32 32, %v1253_v29  ;;  %v1255_v12 = vshll.u32 %v4663_v31, %v1253_v29  ;;  %v1258_v48 = vsub.s32 4294967266, %v1253_v29  ;;  %v4712_v13 = vsel %vm4678_vm1, 0, %v1269_v33 }
 0x149   :  { %v1344_v57 = vadd.s32 1, %v4699_v36  ;;  %v3245_v45 = vadd.s32 4294967169, %v1394_v51  ;;  %v4715_v19 = vpop.eup %3423  ;;  %vm1343_vm9 = vc.u32 %v4706_v40, %v4698_v28  ;;  %v1397_v31 = vand.u32 8388607, %v5215_v11 }
 0x14a   :  { %5286 = vst [vmem:[#allocation28_spill] sm:$0xff] %v4715_v19  ;;  %v1256_v25 = vshrl.u32 %v1238_v27, %v1254_v8  ;;  %v1259_v7 = vadd.s32 127, %v1258_v48  ;;  %v4720_v10 = vpop.eup %3425  ;;  %v5213_v34 = vxor.u32 2147483648, %v4715_v19  ;;  %v4725_v16 = vmul.f32 16.0, %v3530_v2 }
 0x14b   :  { %5287 = vst [vmem:[#allocation29_spill] sm:$0xff] %v4720_v10  ;;  %v1345_v23 = vsel %vm1343_vm9, %v1344_v57, %v4699_v36  ;;  %v1400_v54 = vadd.s32 1, %v3245_v45  ;;  %v5214_v32 = vxor.u32 2147483648, %v4720_v10  ;;  %vm5223_vm6 = vweird.f32 %v4387_v5 }
 0x14c   :  { %v1257_v38 = vor.u32 %v1256_v25, %v1255_v12  ;;  %v1260_v27 = vshll.u32 %v1259_v7, 23  ;;  %v1346_v14 = vadd.s32 %v1345_v23, %v1341_v59  ;;  %v1179_v4 = vsel %vm1177_vm8, %v5213_v34, %v4720_v10 }
 0x14d   :  { %v1275_v33 = vadd.s32 3, %v4712_v13  ;;  %vm1401_vm4 = vcmp.gt.s32.totalorder %v1400_v54, 0  ;;  %v1176_v36 = vsel %vm1174_vm7, %v4715_v19, %v5214_v32  ;;  %v1398_v12 = vor.u32 8388608, %v1397_v31 }
 0x14e   :  { %v1261_v6 = vor.u32 4788187, %v1260_v27  ;;  %v1264_v29 = vcvt.s32.f32 %v1257_v38  ;;  %v1347_v51 = vadd.s32 536870912, %v1346_v14  ;;  %v1180_v8 = vsel %vm1173_vm10, %v1176_v36, %v1179_v4 }
 0x14f   :  { %v1402_v48 = vsel %vm1401_vm4, %v1400_v54, 0  ;;  %v1497_v59 = vand.u32 2139095040, %v4725_v16  ;;  %v1181_v57 = vsel %vm5223_vm6, nan, %v1180_v8  ;;  %vm1288_vm8 = vcmp.lt.s32.totalorder %v4550_v43, 0 }
 0x150   :  { %v1262_v45 = vand.u32 2147483647, %v1261_v6  ;;  %v1348_v25 = vshrl.u32 %v1347_v51, 30  ;;  %3153 = vst [vmem:[#allocation5 + $0xa] sm:$0x1] %v1181_v57  ;;  %v4743_v7 = vand.u32 3, %v1275_v33  ;;  %v4755_v4 = vadd.s32 %v4698_v28, %v4706_v40 }
 0x151   :  { %v5288_v23 = vand.u32 2147483647, %v4550_v43  ;;  %v4751_v39 = vshrl.u32 %v1402_v48, 5  ;;  %v1404_v31 = vand.u32 31, %v1402_v48  ;;  %v4758_v8 = vshll.u32 %v1398_v12, 8 }
 0x152   :  { %v1265_v27 = vmul.f32 %v1264_v29, %v1262_v45  ;;  %v1349_v36 = vshll.u32 %v1348_v25, 30  ;;  %v1372_v6 = vsub.s32 4, %v1348_v25  ;;  %v1498_v57 = vshrl.u32 %v1497_v59, 23 }
 0x153   :  { %vm4747_vm7 = vcmp.le.f32.partialorder %v5288_v23, 0.7853982  ;;  %v1405_v51 = vsub.s32 32, %v1404_v31  ;;  %v1407_v33 = vshll.u32 %v5261_v53, %v1404_v31  ;;  %v1410_v32 = vshll.u32 %v5262_v63, %v1404_v31 }
 0x154   :  { %v1266_v23 = vxor.u32 2147483648, %v1265_v27  ;;  %v4760_v34 = vsub.s32 %v1346_v14, %v1349_v36  ;;  %v1413_v48 = vshll.u32 %v5263_v37, %v1404_v31  ;;  %v1416_v40 = vshll.u32 %v5254_v9, %v1404_v31 }
 0x155   :  { %v1408_v29 = vshrl.u32 %v5262_v63, %v1405_v51  ;;  %v1411_v28 = vshrl.u32 %v5263_v37, %v1405_v51  ;;  %vm1422_vm4 = vcmp.lt.s32.totalorder %v4751_v39, 1  ;;  %v1373_v14 = vsel %vm1288_vm8, %v1372_v6, %v1348_v25 }
 0x156   :  { %v1267_v12 = vsel %vm1184_vm12, %v1266_v23, %v1265_v27  ;;  %v1352_v59 = vsub.s32 0, %v4760_v34  ;;  %v1414_v45 = vshrl.u32 %v5254_v9, %v1405_v51  ;;  %v1406_v11 = vshrl.u32 %v5261_v53, %v1405_v51 }
 0x157   :  { %v1270_v36 = vsel %vm4678_vm1, %v4459_v15, %v1267_v12  ;;  %v1409_v54 = vor.u32 %v1408_v29, %v1407_v33  ;;  %v1417_v5 = vshrl.u32 %v5278_v20, %v1405_v51  ;;  %v1412_v27 = vor.u32 %v1411_v28, %v1410_v32 }
 0x158   :  { %3427 = vcosq.f32 %v1270_v36  ;;  %v3242_v19 = vmin.u32 %v1352_v59, %v4760_v34  ;;  %v1415_v23 = vor.u32 %v1414_v45, %v1413_v48  ;;  %v1419_v25 = vshll.u32 %v5278_v20, %v1404_v31 }
 0x159   :  { %3429 = vsinq.f32 %v1270_v36  ;;  %v1418_v10 = vor.u32 %v1417_v5, %v1416_v40  ;;  %v1420_v6 = vshrl.u32 %v5265_v58, %v1405_v51  ;;  %v4784_v44 = vsel %vm4747_vm7, 0, %v1373_v14 }
 0x15a   :  { %v1354_v52 = vclz %v3242_v19  ;;  %v3249_v12 = vadd.s32 4294967169, %v1498_v57  ;;  %v5291_v33 = vand.u32 2147483647, %v4725_v16  ;;  %vm1278_vm1 = vcmp.eq.s32.totalorder %v4743_v7, 0 }
 0x15b   :  { %v1421_v59 = vor.u32 %v1420_v6, %v1419_v25  ;;  %vm1423_vm12 = vcmp.lt.s32.totalorder %v4751_v39, 2  ;;  %vm1424_vm10 = vcmp.lt.s32.totalorder %v4751_v39, 3  ;;  %vm1425_vm9 = vcmp.lt.s32.totalorder %v4751_v39, 4 }
 0x15c   :  { %v1501_v29 = vand.u32 8388607, %v5291_v33  ;;  %vm1277_vm6 = vcmp.lt.s32.totalorder %v4743_v7, 2  ;;  %v3243_v5 = vadd.s32 4294967294, %v1354_v52  ;;  %v1426_v19 = vsel %vm1422_vm4, %v1406_v11, %v1409_v54 }
 0x15d   :  { %v1427_v32 = vsel %vm1425_vm9, %v1415_v23, 2102212464  ;;  %v1430_v31 = vsel %vm1422_vm4, %v1409_v54, %v1412_v27  ;;  %vm5227_vm13 = vweird.f32 %v4459_v15  ;;  %v1431_v57 = vsel %vm1425_vm9, %v1418_v10, 920167782 }
 0x15e   :  { %v1428_v51 = vsel %vm1424_vm10, %v1412_v27, %v1427_v32  ;;  %v1434_v48 = vsel %vm1422_vm4, %v1412_v27, %v1415_v23  ;;  %v1435_v28 = vsel %vm1425_vm9, %v1421_v59, 1326507024  ;;  %vm3244_vm2 = vcmp.lt.s32.totalorder %v3243_v5, 0 }
 0x15f   :  { %v1379_v40 = vadd.s32 3, %v4784_v44  ;;  %v1432_v14 = vsel %vm1424_vm10, %v1415_v23, %v1431_v57  ;;  %v1436_v52 = vsel %vm1424_vm10, %v1418_v10, %v1435_v28  ;;  %v1357_v45 = vsel %vm3244_vm2, 0, %v3243_v5 }
 0x160   :  { %v1429_v11 = vsel %vm1423_vm12, %v1426_v19, %v1428_v51  ;;  %v1433_v54 = vsel %vm1423_vm12, %v1430_v31, %v1432_v14  ;;  %v1437_v36 = vsel %vm1423_vm12, %v1434_v48, %v1436_v52  ;;  %v1358_v25 = vsub.s32 32, %v1357_v45 }
 0x161   :  { %v1359_v6 = vshll.u32 %v4760_v34, %v1357_v45  ;;  %v1362_v27 = vsub.s32 4294967266, %v1357_v45  ;;  %v1504_v33 = vadd.s32 1, %v3249_v12  ;;  %vm1281_vm2 = vcmp.eq.s32.totalorder %v4743_v7, 2 }
 0x162   :  { %v4809_v59 = vmul.u32.u64.low %v4758_v8, %v1437_v36  ;;  %v4810_v32 = vmul.u32.u64.high %v4758_v8, %v1437_v36, %v4809_v59  ;;  %v4813_v10 = vmul.u32.u64.low %v4758_v8, %v1433_v54  ;;  %v4814_v23 = vmul.u32.u64.high %v4758_v8, %v1433_v54, %v4813_v10  ;;  %v4817_v5 = vpop.eup %3427 }
 0x163   :  { %v1360_v39 = vshrl.u32 %v4755_v4, %v1358_v25  ;;  %v1363_v19 = vadd.s32 127, %v1362_v27  ;;  %vm1505_vm4 = vcmp.gt.s32.totalorder %v1504_v33, 0  ;;  %v4821_v34 = vpop.eup %3429  ;;  %v5226_v12 = vxor.u32 2147483648, %v4817_v5 }
 0x164   :  { %v1445_v31 = vmul.u32 %v4758_v8, %v1429_v11  ;;  %v1502_v51 = vor.u32 8388608, %v1501_v29  ;;  %v1506_v57 = vsel %vm1505_vm4, %v1504_v33, 0  ;;  %v1279_v48 = vxor.u32 2147483648, %v4821_v34 }
 0x165   :  { %v1361_v28 = vor.u32 %v1360_v39, %v1359_v6  ;;  %v1364_v14 = vshll.u32 %v1363_v19, 23  ;;  %v4826_v52 = vshrl.u32 %v1506_v57, 5  ;;  %v1283_v4 = vsel %vm1281_vm2, %v5226_v12, %v4821_v34 }
 0x166   :  { %v4831_v45 = vand.u32 3, %v1379_v40  ;;  %vm1447_vm12 = vc.u32 %v4810_v32, %v4813_v10  ;;  %v1448_v54 = vadd.s32 1, %v4814_v23  ;;  %v1280_v8 = vsel %vm1278_vm1, %v4817_v5, %v1279_v48 }
 0x167   :  { %v1365_v29 = vor.u32 4788187, %v1364_v14  ;;  %v1368_v11 = vcvt.s32.f32 %v1361_v28  ;;  %v1508_v36 = vand.u32 31, %v1506_v57  ;;  %v1284_v25 = vsel %vm1277_vm6, %v1280_v8, %v1283_v4 }
 0x168   :  { %v1449_v40 = vsel %vm1447_vm12, %v1448_v54, %v4814_v23  ;;  %vm1526_vm10 = vcmp.lt.s32.totalorder %v4826_v52, 1  ;;  %v4845_v6 = vshll.u32 %v1502_v51, 8  ;;  %v1285_v27 = vsel %vm5227_vm13, nan, %v1284_v25 }
 0x169   :  { %v1366_v33 = vand.u32 2147483647, %v1365_v29  ;;  %v1450_v59 = vadd.s32 %v1449_v40, %v1445_v31  ;;  %v1509_v39 = vsub.s32 32, %v1508_v36  ;;  %3154 = vst [vmem:[#allocation5 + $0xb] sm:$0x1] %v1285_v27  ;;  %vm5229_vm1 = vcmp.lt.s32.totalorder %v4661_v17, 0 }
 0x16a   :  { %v1511_v19 = vshll.u32 %v5261_v53, %v1508_v36  ;;  %v1514_v7 = vshll.u32 %v5262_v63, %v1508_v36  ;;  %v1517_v57 = vshll.u32 %v5263_v37, %v1508_v36  ;;  %v1520_v23 = vshll.u32 %v5254_v9, %v1508_v36 }
 0x16b   :  { %v1369_v28 = vmul.f32 %v1368_v11, %v1366_v33  ;;  %v1451_v51 = vadd.s32 536870912, %v1450_v59  ;;  %v1510_v14 = vshrl.u32 %v5261_v53, %v1509_v39  ;;  %v1512_v4 = vshrl.u32 %v5262_v63, %v1509_v39 }
 0x16c   :  { %v1515_v31 = vshrl.u32 %v5263_v37, %v1509_v39  ;;  %v1518_v54 = vshrl.u32 %v5254_v9, %v1509_v39  ;;  %v1521_v8 = vshrl.u32 %v5278_v20, %v1509_v39  ;;  %v1523_v29 = vshll.u32 %v5278_v20, %v1508_v36 }
 0x16d   :  { %v1370_v25 = vxor.u32 2147483648, %v1369_v28  ;;  %v1452_v40 = vshrl.u32 %v1451_v51, 30  ;;  %v1513_v27 = vor.u32 %v1512_v4, %v1511_v19  ;;  %v1524_v12 = vshrl.u32 %v5265_v58, %v1509_v39 }
 0x16e   :  { %v5292_v11 = vand.u32 2147483647, %v4661_v17  ;;  %v1516_v53 = vor.u32 %v1515_v31, %v1514_v7  ;;  %v1519_v63 = vor.u32 %v1518_v54, %v1517_v57  ;;  %v1522_v37 = vor.u32 %v1521_v8, %v1520_v23 }
 0x16f   :  { %vm1527_vm9 = vcmp.lt.s32.totalorder %v4826_v52, 2  ;;  %v1371_v9 = vsel %vm1288_vm8, %v1370_v25, %v1369_v28  ;;  %v1453_v20 = vshll.u32 %v1452_v40, 30  ;;  %v1476_v36 = vsub.s32 4, %v1452_v40 }
 0x170   :  { %vm4863_vm6 = vcmp.le.f32.partialorder %v5292_v11, 0.7853982  ;;  %vm1528_vm2 = vcmp.lt.s32.totalorder %v4826_v52, 3  ;;  %v1374_v58 = vsel %vm4747_vm7, %v4550_v43, %v1371_v9  ;;  %v1525_v39 = vor.u32 %v1524_v12, %v1523_v29 }
 0x171   :  { %vm1529_vm4 = vcmp.lt.s32.totalorder %v4826_v52, 4  ;;  %v1530_v19 = vsel %vm1526_vm10, %v1510_v14, %v1513_v27  ;;  %3431 = vcosq.f32 %v1374_v58  ;;  %v4877_v7 = vsub.s32 %v1450_v59, %v1453_v20 }
 0x172   :  { %v1531_v57 = vsel %vm1529_vm4, %v1519_v63, 2102212464  ;;  %v1534_v23 = vsel %vm1526_vm10, %v1513_v27, %v1516_v53  ;;  %3433 = vsinq.f32 %v1374_v58  ;;  %v1535_v12 = vsel %vm1529_vm4, %v1522_v37, 920167782 }
 0x173   :  { %v1532_v38 = vsel %vm1528_vm2, %v1516_v53, %v1531_v57  ;;  %v1691_v28 = vand.u32 3, %v3700_v21  ;;  %vm1385_vm8 = vcmp.eq.s32.totalorder %v4831_v45, 2  ;;  %v1456_v59 = vsub.s32 0, %v4877_v7 }
 0x174   :  { %v1477_v51 = vsel %vm5229_vm1, %v1476_v36, %v1452_v40  ;;  %v1536_v14 = vsel %vm1528_vm2, %v1519_v63, %v1535_v12  ;;  %vm1382_vm7 = vcmp.eq.s32.totalorder %v4831_v45, 0  ;;  %v1533_v4 = vsel %vm1527_vm9, %v1530_v19, %v1532_v38 }
 0x175   :  { %v1537_v31 = vsel %vm1527_vm9, %v1534_v23, %v1536_v14  ;;  %v1538_v21 = vsel %vm1526_vm10, %v1516_v53, %v1519_v63  ;;  %v1539_v54 = vsel %vm1529_vm4, %v1525_v39, 1326507024  ;;  %vm1381_vm12 = vcmp.lt.s32.totalorder %v4831_v45, 2 }
 0x176   :  { %v1446_v8 = vadd.s32 %v4813_v10, %v4810_v32  ;;  %v3246_v29 = vmin.u32 %v1456_v59, %v4877_v7  ;;  %v1540_v25 = vsel %vm1528_vm2, %v1522_v37, %v1539_v54  ;;  %v1794_v40 = vand.u32 3, %v3704_v24 }
 0x177   :  { %vm1378_vm13 = vweird.f32 %v4550_v43  ;;  %v1541_v27 = vsel %vm1527_vm9, %v1538_v21, %v1540_v25  ;;  %v4914_v11 = vmul.u32.u64.low %v4845_v6, %v1537_v31  ;;  %v4915_v53 = vmul.u32.u64.high %v4845_v6, %v1537_v31, %v4914_v11 }
 0x178   :  { %vm1693_vm10 = vcmp.eq.s32.totalorder %v1691_v28, 0  ;;  %v1458_v63 = vclz %v3246_v29  ;;  %v4920_v32 = vsel %vm4863_vm6, 0, %v1477_v51  ;;  %v1549_v10 = vmul.u32 %v4845_v6, %v1533_v4 }
 0x179   :  { %vm1692_vm2 = vcmp.lt.s32.totalorder %v1691_v28, 2  ;;  %v4924_v24 = vmul.u32.u64.low %v4845_v6, %v1541_v27  ;;  %v4925_v37 = vmul.u32.u64.high %v4845_v6, %v1541_v27, %v4924_v24  ;;  %v5295_v52 = vxor.u32 2147483648, %v3794_v61 }
 0x17a   :  { %vm1696_vm9 = vcmp.eq.s32.totalorder %v1691_v28, 2  ;;  %v3247_v20 = vadd.s32 4294967294, %v1458_v63  ;;  %v5296_v36 = vxor.u32 2147483648, %v3782_v56  ;;  %vm1795_vm4 = vcmp.lt.s32.totalorder %v1794_v40, 2 }
 0x17b   :  { %v1695_v9 = vsel %vm1693_vm10, %v3782_v56, %v5295_v52  ;;  %vm1796_vm11 = vcmp.eq.s32.totalorder %v1794_v40, 0  ;;  %v1552_v39 = vadd.s32 1, %v4915_v53  ;;  %v5297_v57 = vxor.u32 2147483648, %v3852_v47  ;;  %v4937_v23 = vpop.eup %3431 }
 0x17c   :  { %v1698_v58 = vsel %vm1696_vm9, %v5296_v36, %v3794_v61  ;;  %vm1799_vm1 = vcmp.eq.s32.totalorder %v1794_v40, 2  ;;  %vm3248_vm5 = vcmp.lt.s32.totalorder %v3247_v20, 0  ;;  %v5298_v56 = vxor.u32 2147483648, %v3844_v46  ;;  %v4945_v28 = vpop.eup %3433 }
 0x17d   :  { %v1699_v19 = vsel %vm1692_vm2, %v1695_v9, %v1698_v58  ;;  %v1798_v6 = vsel %vm1796_vm11, %v3844_v46, %v5297_v57  ;;  %v1897_v12 = vand.u32 3, %v3849_v41  ;;  %v1386_v59 = vxor.u32 2147483648, %v4937_v23 }
 0x17e   :  { %v1700_v38 = vsel %vm130_vm15, nan, %v1699_v19  ;;  %v1801_v61 = vsel %vm1799_vm1, %v5298_v56, %v3852_v47  ;;  %v1461_v51 = vsel %vm3248_vm5, 0, %v3247_v20  ;;  %v1483_v14 = vadd.s32 3, %v4920_v32 }
 0x17f   :  { %vm1551_vm11 = vc.u32 %v4925_v37, %v4914_v11  ;;  %3158 = vst [vmem:[#allocation5 + $0xf] sm:$0x1] %v1700_v38  ;;  %v1383_v0 = vxor.u32 2147483648, %v4945_v28  ;;  %v1462_v4 = vsub.s32 32, %v1461_v51  ;;  %v1463_v31 = vshll.u32 %v4877_v7, %v1461_v51 }
 0x180   :  { %v1466_v46 = vsub.s32 4294967266, %v1461_v51  ;;  %v1387_v41 = vsel %vm1385_vm8, %v1386_v59, %v4945_v28  ;;  %v1553_v47 = vsel %vm1551_vm11, %v1552_v39, %v4915_v53  ;;  %v1802_v21 = vsel %vm1795_vm4, %v1798_v6, %v1801_v61 }
 0x181   :  { %vm1898_vm15 = vcmp.lt.s32.totalorder %v1897_v12, 2  ;;  %v1384_v54 = vsel %vm1382_vm7, %v4937_v23, %v1383_v0  ;;  %v1464_v29 = vshrl.u32 %v1446_v8, %v1462_v4  ;;  %v1554_v25 = vadd.s32 %v1553_v47, %v1549_v10 }
 0x182   :  { %v1467_v7 = vadd.s32 127, %v1466_v46  ;;  %v1388_v27 = vsel %vm1381_vm12, %v1384_v54, %v1387_v41  ;;  %v1803_v63 = vsel %vm234_vm3, nan, %v1802_v21  ;;  %vm1899_vm5 = vcmp.eq.s32.totalorder %v1897_v12, 0 }
 0x183   :  { %vm1902_vm1 = vcmp.eq.s32.totalorder %v1897_v12, 2  ;;  %v1389_v40 = vsel %vm1378_vm13, nan, %v1388_v27  ;;  %v1465_v53 = vor.u32 %v1464_v29, %v1463_v31  ;;  %v1555_v52 = vadd.s32 536870912, %v1554_v25  ;;  %3159 = vst [vmem:[#allocation5 + $0x10] sm:$0x1] %v1803_v63  ;;  %v5311_v63 = vld [vmem:[#allocation13_spill] sm:$0xff] }
 0x184   :  { %v1468_v24 = vshll.u32 %v1467_v7, 23  ;;  %3155 = vst [vmem:[#allocation5 + $0xc] sm:$0x1] %v1389_v40  ;;  %v5299_v8 = vxor.u32 2147483648, %v3937_v55  ;;  %v5300_v45 = vxor.u32 2147483648, %v3928_v50  ;;  %v2000_v1 = vand.u32 3, %v3954_v35 }
 0x185   :  { %v2103_v20 = vand.u32 3, %v4054_v60  ;;  %v1472_v58 = vcvt.s32.f32 %v1465_v53  ;;  %v1556_v39 = vshrl.u32 %v1555_v52, 30  ;;  %v5302_v35 = vxor.u32 2147483648, %v4044_v30  ;;  %v5312_v53 = vld [vmem:[#allocation17_spill] sm:$0xff] }
 0x186   :  { %v1901_v10 = vsel %vm1899_vm5, %v3928_v50, %v5299_v8  ;;  %v1904_v9 = vsel %vm1902_vm1, %v5300_v45, %v3937_v55  ;;  %v1469_v36 = vor.u32 4788187, %v1468_v24  ;;  %vm2001_vm3 = vcmp.lt.s32.totalorder %v2000_v1, 2 }
 0x187   :  { %v1905_v19 = vsel %vm1898_vm15, %v1901_v10, %v1904_v9  ;;  %vm2002_vm8 = vcmp.eq.s32.totalorder %v2000_v1, 0  ;;  %vm2005_vm7 = vcmp.eq.s32.totalorder %v2000_v1, 2  ;;  %v1557_v38 = vshll.u32 %v1556_v39, 30  ;;  %v5313_v10 = vld [vmem:[#allocation15_spill] sm:$0xff]  ;;  %v5315_v9 = vld [vmem:[#allocation14_spill] sm:$0xff] }
 0x188   :  { %v1906_v57 = vsel %vm338_vm14, nan, %v1905_v19  ;;  %v1470_v6 = vand.u32 2147483647, %v1469_v36  ;;  %v1580_v56 = vsub.s32 4, %v1556_v39  ;;  %v5301_v50 = vxor.u32 2147483648, %v4049_v26  ;;  %v5317_v36 = vld [vmem:[#allocation23_spill] sm:$0xff] }
 0x189   :  { %3160 = vst [vmem:[#allocation5 + $0x11] sm:$0x1] %v1906_v57  ;;  %v2007_v60 = vsel %vm2005_vm7, %v5302_v35, %v4049_v26  ;;  %vm2104_vm12 = vcmp.lt.s32.totalorder %v2103_v20, 2  ;;  %vm2105_vm10 = vcmp.eq.s32.totalorder %v2103_v20, 0  ;;  %vm2108_vm2 = vcmp.eq.s32.totalorder %v2103_v20, 2  ;;  %v5320_v57 = vld [vmem:[#allocation19_spill] sm:$0xff] }
 0x18a   :  { %v2004_v55 = vsel %vm2002_vm8, %v4044_v30, %v5301_v50  ;;  %v1473_v2 = vmul.f32 %v1472_v58, %v1470_v6  ;;  %v4988_v61 = vsub.s32 %v1554_v25, %v1557_v38  ;;  %vm1496_vm14 = vcmp.lt.s32.totalorder %v4725_v16, 0  ;;  %v5322_v38 = vld [vmem:[#allocation18_spill] sm:$0xff] }
 0x18b   :  { %v2008_v12 = vsel %vm2001_vm3, %v2004_v55, %v2007_v60  ;;  %v5303_v4 = vxor.u32 2147483648, %v4152_v42  ;;  %v5304_v30 = vxor.u32 2147483648, %v4149_v49  ;;  %v5305_v41 = vand.u32 2147483647, %v4725_v16 }
 0x18c   :  { %v2009_v51 = vsel %vm442_vm0, nan, %v2008_v12  ;;  %v1474_v46 = vxor.u32 2147483648, %v1473_v2  ;;  %v1560_v21 = vsub.s32 0, %v4988_v61  ;;  %v5006_v54 = vand.u32 3, %v1483_v14 }
 0x18d   :  { %v2107_v31 = vsel %vm2105_vm10, %v4149_v49, %v5303_v4  ;;  %v2110_v26 = vsel %vm2108_vm2, %v5304_v30, %v4152_v42  ;;  %vm5001_vm9 = vcmp.le.f32.partialorder %v5305_v41, 0.7853982  ;;  %3161 = vst [vmem:[#allocation5 + $0x12] sm:$0x1] %v2009_v51  ;;  %v1581_v29 = vsel %vm1496_vm14, %v1580_v56, %v1556_v39  ;;  %v5309_v42 = vld [vmem:[#allocation11_spill] sm:$0xff]  ;;  %v5326_v51 = vld [vmem:[#allocation21_spill] sm:$0xff] }
 0x18e   :  { %v2111_v22 = vsel %vm2104_vm12, %v2107_v31, %v2110_v26  ;;  %vm5308_vm0 = vweird.f32 %v3769_v62  ;;  %v2206_v7 = vand.u32 3, %v5309_v42  ;;  %vm5310_vm4 = vcmp.lt.s32.totalorder %v4661_v17, 0 }
 0x18f   :  { %v2112_v49 = vsel %vm5308_vm0, nan, %v2111_v22  ;;  %v1475_v25 = vsel %vm5310_vm4, %v1474_v46, %v1473_v2  ;;  %v3250_v27 = vmin.u32 %v1560_v21, %v4988_v61  ;;  %v2309_v40 = vand.u32 3, %v5311_v63  ;;  %v5324_v2 = vld [vmem:[#allocation22_spill] sm:$0xff]  ;;  %v5328_v21 = vld [vmem:[#allocation9_spill] sm:$0xff] }
 0x190   :  { %3162 = vst [vmem:[#allocation5 + $0x13] sm:$0x1] %v2112_v49  ;;  %v2412_v24 = vand.u32 3, %v5312_v53  ;;  %v1478_v14 = vsel %vm4863_vm6, %v4661_v17, %v1475_v25  ;;  %vm2207_vm11 = vcmp.lt.s32.totalorder %v2206_v7, 2  ;;  %vm2208_vm15 = vcmp.eq.s32.totalorder %v2206_v7, 0 }
 0x191   :  { %vm2211_vm5 = vcmp.eq.s32.totalorder %v2206_v7, 2  ;;  %3435 = vcosq.f32 %v1478_v14  ;;  %v1550_v62 = vadd.s32 %v4914_v11, %v4925_v37  ;;  %v1562_v52 = vclz %v3250_v27  ;;  %v5318_v37 = vld [vmem:[#allocation8_spill] sm:$0xff]  ;;  %v5330_v7 = vld [vmem:[#allocation10_spill] sm:$0xff]  ;;  %v5332_v27 = vld [vmem:[#allocation25_spill] sm:$0xff] }
 0x192   :  { %v5025_v8 = vsel %vm5001_vm9, 0, %v1581_v29  ;;  %3437 = vsinq.f32 %v1478_v14  ;;  %v5314_v45 = vxor.u32 2147483648, %v5313_v10  ;;  %v5316_v33 = vxor.u32 2147483648, %v5315_v9 }
 0x193   :  { %v2515_v58 = vand.u32 3, %v5317_v36  ;;  %vm1489_vm6 = vcmp.eq.s32.totalorder %v5006_v54, 2  ;;  %v3251_v39 = vadd.s32 4294967294, %v1562_v52  ;;  %vm2310_vm1 = vcmp.lt.s32.totalorder %v2309_v40, 2  ;;  %v5336_v52 = vld [vmem:[#allocation26_spill] sm:$0xff] }
 0x194   :  { %v2210_v1 = vsel %vm2208_vm15, %v5315_v9, %v5314_v45  ;;  %v2213_v20 = vsel %vm2211_vm5, %v5316_v33, %v5313_v10  ;;  %vm2311_vm3 = vcmp.eq.s32.totalorder %v2309_v40, 0  ;;  %vm1486_vm8 = vcmp.eq.s32.totalorder %v5006_v54, 0 }
 0x195   :  { %v2214_v11 = vsel %vm2207_vm11, %v2210_v1, %v2213_v20  ;;  %vm5319_vm7 = vweird.f32 %v5318_v37  ;;  %v5321_v6 = vxor.u32 2147483648, %v5320_v57  ;;  %vm2314_vm12 = vcmp.eq.s32.totalorder %v2309_v40, 2  ;;  %v5334_v40 = vld [vmem:[#allocation24_spill] sm:$0xff] }
 0x196   :  { %v2215_v19 = vsel %vm5319_vm7, nan, %v2214_v11  ;;  %vm2413_vm10 = vcmp.lt.s32.totalorder %v2412_v24, 2  ;;  %vm1485_vm2 = vcmp.lt.s32.totalorder %v5006_v54, 2  ;;  %vm3252_vm0 = vcmp.lt.s32.totalorder %v3251_v39, 0 }
 0x197   :  { %v2313_v56 = vsel %vm2311_vm3, %v5322_v38, %v5321_v6  ;;  %3163 = vst [vmem:[#allocation5 + $0x14] sm:$0x1] %v2215_v19  ;;  %v5323_v50 = vxor.u32 2147483648, %v5322_v38  ;;  %vm2414_vm4 = vcmp.eq.s32.totalorder %v2412_v24, 0  ;;  %vm2417_vm11 = vcmp.eq.s32.totalorder %v2412_v24, 2 }
 0x198   :  { %vm1482_vm15 = vweird.f32 %v4661_v17  ;;  %v1565_v35 = vsel %vm3252_vm0, 0, %v3251_v39  ;;  %v5325_v12 = vxor.u32 2147483648, %v5324_v2  ;;  %v5327_v31 = vxor.u32 2147483648, %v5326_v51  ;;  %v5337_v39 = vld [vmem:[#allocation12_spill] sm:$0xff] }
 0x199   :  { %v2316_v55 = vsel %vm2314_vm12, %v5323_v50, %v5320_v57  ;;  %v1566_v26 = vsub.s32 32, %v1565_v35  ;;  %v1567_v46 = vshll.u32 %v4988_v61, %v1565_v35  ;;  %v1570_v41 = vsub.s32 4294967266, %v1565_v35  ;;  %v5340_v57 = vld [vmem:[#allocation27_spill] sm:$0xff]  ;;  %v5342_v35 = vld [vmem:[#allocation29_spill] sm:$0xff] }
 0x19a   :  { %v2317_v60 = vsel %vm2310_vm1, %v2313_v56, %v2316_v55  ;;  %v2416_v4 = vsel %vm2414_vm4, %v5326_v51, %v5325_v12  ;;  %v2419_v30 = vsel %vm2417_vm11, %v5327_v31, %v5324_v2  ;;  %vm5329_vm5 = vweird.f32 %v5328_v21  ;;  %v5344_v2 = vld [vmem:[#allocation28_spill] sm:$0xff] }
 0x19b   :  { %v2318_v22 = vsel %vm5329_vm5, nan, %v2317_v60  ;;  %v2420_v29 = vsel %vm2413_vm10, %v2416_v4, %v2419_v30  ;;  %vm2516_vm3 = vcmp.lt.s32.totalorder %v2515_v58, 2  ;;  %vm2517_vm1 = vcmp.eq.s32.totalorder %v2515_v58, 0 }
 0x19c   :  { %3164 = vst [vmem:[#allocation5 + $0x15] sm:$0x1] %v2318_v22  ;;  %vm2520_vm7 = vcmp.eq.s32.totalorder %v2515_v58, 2  ;;  %v1568_v49 = vshrl.u32 %v1550_v62, %v1566_v26  ;;  %v1571_v42 = vadd.s32 127, %v1570_v41  ;;  %vm5331_vm12 = vweird.f32 %v5330_v7  ;;  %v5067_v62 = vpop.eup %3435  ;;  %v5345_v26 = vld [vmem:[#allocation16_spill] sm:$0xff] }
 0x19d   :  { %v2421_v25 = vsel %vm5331_vm12, nan, %v2420_v29  ;;  %v5333_v63 = vxor.u32 2147483648, %v5332_v27  ;;  %v5335_v61 = vxor.u32 2147483648, %v5334_v40  ;;  %v2618_v24 = vand.u32 3, %v5336_v52  ;;  %v3438_v36 = vpop.eup %3437  ;;  %v5348_v22 = vld [vmem:[#allocation20_spill] sm:$0xff] }
 0x19e   :  { %3165 = vst [vmem:[#allocation5 + $0x16] sm:$0x1] %v2421_v25  ;;  %v2721_v10 = vand.u32 3, %v4640_v18  ;;  %v2824_v45 = vand.u32 3, %v4712_v13  ;;  %v1569_v9 = vor.u32 %v1568_v49, %v1567_v46  ;;  %v1572_v1 = vshll.u32 %v1571_v42, 23 }
 0x19f   :  { %v2519_v53 = vsel %vm2517_vm1, %v5334_v40, %v5333_v63  ;;  %v2522_v14 = vsel %vm2520_vm7, %v5335_v61, %v5332_v27  ;;  %v2927_v20 = vand.u32 3, %v4784_v44  ;;  %v1490_v58 = vxor.u32 2147483648, %v5067_v62 }
 0x1a0   :  { %v2523_v33 = vsel %vm2516_vm3, %v2519_v53, %v2522_v14  ;;  %vm5338_vm10 = vweird.f32 %v5337_v39  ;;  %vm2619_vm0 = vcmp.lt.s32.totalorder %v2618_v24, 2  ;;  %vm2620_vm4 = vcmp.eq.s32.totalorder %v2618_v24, 0 }
 0x1a1   :  { %v2524_v11 = vsel %vm5338_vm10, nan, %v2523_v33  ;;  %v1487_v37 = vxor.u32 2147483648, %v3438_v36  ;;  %v1573_v19 = vor.u32 4788187, %v1572_v1  ;;  %v1576_v18 = vcvt.s32.f32 %v1569_v9 }
 0x1a2   :  { %3166 = vst [vmem:[#allocation5 + $0x17] sm:$0x1] %v2524_v11  ;;  %v5339_v13 = vxor.u32 2147483648, %v4626_v3  ;;  %v1491_v38 = vsel %vm1489_vm6, %v1490_v58, %v3438_v36  ;;  %vm2623_vm11 = vcmp.eq.s32.totalorder %v2618_v24, 2  ;;  %vm2722_vm5 = vcmp.lt.s32.totalorder %v2721_v10, 2 }
 0x1a3   :  { %vm2723_vm3 = vcmp.eq.s32.totalorder %v2721_v10, 0  ;;  %v1488_v44 = vsel %vm1486_vm8, %v5067_v62, %v1487_v37  ;;  %v1574_v56 = vand.u32 2147483647, %v1573_v19  ;;  %v5341_v50 = vxor.u32 2147483648, %v5340_v57 }
 0x1a4   :  { %v2622_v6 = vsel %vm2620_vm4, %v5340_v57, %v5339_v13  ;;  %v5343_v60 = vxor.u32 2147483648, %v5342_v35  ;;  %v1492_v51 = vsel %vm1485_vm2, %v1488_v44, %v1491_v38  ;;  %vm2726_vm6 = vcmp.eq.s32.totalorder %v2721_v10, 2 }
 0x1a5   :  { %v2625_v55 = vsel %vm2623_vm11, %v5341_v50, %v4626_v3  ;;  %vm2825_vm1 = vcmp.lt.s32.totalorder %v2824_v45, 2  ;;  %v1493_v31 = vsel %vm1482_vm15, nan, %v1492_v51  ;;  %v1577_v30 = vmul.f32 %v1576_v18, %v1574_v56 }
 0x1a6   :  { %v2725_v12 = vsel %vm2723_vm3, %v5344_v2, %v5343_v60  ;;  %v2626_v4 = vsel %vm2619_vm0, %v2622_v6, %v2625_v55  ;;  %vm5346_vm8 = vweird.f32 %v5345_v26  ;;  %v5347_v3 = vxor.u32 2147483648, %v5344_v2  ;;  %3156 = vst [vmem:[#allocation5 + $0xd] sm:$0x1] %v1493_v31 }
 0x1a7   :  { %v2627_v46 = vsel %vm5346_vm8, nan, %v2626_v4  ;;  %vm2826_vm2 = vcmp.eq.s32.totalorder %v2824_v45, 0  ;;  %vm2829_vm7 = vcmp.eq.s32.totalorder %v2824_v45, 2  ;;  %vm2928_vm12 = vcmp.lt.s32.totalorder %v2927_v20, 2 }
 0x1a8   :  { %v2728_v41 = vsel %vm2726_vm6, %v5347_v3, %v5342_v35  ;;  %3167 = vst [vmem:[#allocation5 + $0x18] sm:$0x1] %v2627_v46  ;;  %v1578_v21 = vxor.u32 2147483648, %v1577_v30  ;;  %vm5349_vm10 = vweird.f32 %v5348_v22  ;;  %v2828_v49 = vsel %vm2826_vm2, %v4817_v5, %v1279_v48 }
 0x1a9   :  { %v2729_v54 = vsel %vm2722_vm5, %v2725_v12, %v2728_v41  ;;  %v5350_v42 = vxor.u32 2147483648, %v4817_v5  ;;  %vm2929_vm0 = vcmp.eq.s32.totalorder %v2927_v20, 0  ;;  %vm2932_vm4 = vcmp.eq.s32.totalorder %v2927_v20, 2 }
 0x1aa   :  { %v2730_v29 = vsel %vm5349_vm10, nan, %v2729_v54  ;;  %v3030_v27 = vand.u32 3, %v4920_v32  ;;  %v1579_v63 = vsel %vm1496_vm14, %v1578_v21, %v1577_v30  ;;  %vm5351_vm11 = vweird.f32 %v4459_v15 }
 0x1ab   :  { %v2831_v7 = vsel %vm2829_vm7, %v5350_v42, %v4821_v34  ;;  %3168 = vst [vmem:[#allocation5 + $0x19] sm:$0x1] %v2730_v29  ;;  %v2931_v48 = vsel %vm2929_vm0, %v4937_v23, %v1383_v0  ;;  %v2934_v5 = vsel %vm2932_vm4, %v1386_v59, %v4945_v28  ;;  %v1582_v34 = vsel %vm5001_vm9, %v4725_v16, %v1579_v63 }
 0x1ac   :  { %v2832_v25 = vsel %vm2825_vm1, %v2828_v49, %v2831_v7  ;;  %v2935_v32 = vsel %vm2928_vm12, %v2931_v48, %v2934_v5  ;;  %vm3031_vm5 = vcmp.lt.s32.totalorder %v3030_v27, 2  ;;  %vm3032_vm14 = vcmp.eq.s32.totalorder %v3030_v27, 0 }
 0x1ad   :  { %v2833_v40 = vsel %vm5351_vm11, nan, %v2832_v25  ;;  %3439 = vcosq.f32 %v1582_v34  ;;  %v2936_v15 = vsel %vm1378_vm13, nan, %v2935_v32  ;;  %v3034_v53 = vsel %vm3032_vm14, %v5067_v62, %v1487_v37 }
 0x1ae   :  { %3169 = vst [vmem:[#allocation5 + $0x1a] sm:$0x1] %v2833_v40  ;;  %vm3035_vm3 = vcmp.eq.s32.totalorder %v3030_v27, 2  ;;  %3441 = vsinq.f32 %v1582_v34  ;;  %3170 = vst [vmem:[#allocation5 + $0x1b] sm:$0x1] %v2936_v15  ;;  %v1587_v28 = vadd.s32 3, %v5025_v8  ;;  %vm1586_vm7 = vweird.f32 %v4725_v16 }
 0x1af   :  { %v3037_v23 = vsel %vm3035_vm3, %v1490_v58, %v3438_v36  ;;  %v3133_v61 = vand.u32 3, %v5025_v8 }
 0x1b0   :  { %v3038_v59 = vsel %vm3031_vm5, %v3034_v53, %v3037_v23  ;;  %v1588_v47 = vand.u32 3, %v1587_v28 }
 0x1b1   :  { %v3039_v0 = vsel %vm1482_vm15, nan, %v3038_v59  ;;  %vm3138_vm6 = vcmp.eq.s32.totalorder %v3133_v61, 2  ;;  %vm3135_vm1 = vcmp.eq.s32.totalorder %v3133_v61, 0  ;;  %vm3134_vm2 = vcmp.lt.s32.totalorder %v3133_v61, 2 }
 0x1b2   :  { %3171 = vst [vmem:[#allocation5 + $0x1c] sm:$0x1] %v3039_v0  ;;  %vm1593_vm9 = vcmp.eq.s32.totalorder %v1588_v47, 2  ;;  %vm1590_vm13 = vcmp.eq.s32.totalorder %v1588_v47, 0  ;;  %vm1589_vm8 = vcmp.lt.s32.totalorder %v1588_v47, 2 }
 0x1b7   :  { %v3440_v14 = vpop.eup %3439 }
 0x1b8   :  { %v3442_v43 = vpop.eup %3441  ;;  %v1594_v52 = vxor.u32 2147483648, %v3440_v14 }
 0x1b9   :  { %v1591_v24 = vxor.u32 2147483648, %v3442_v43 }
 0x1ba   :  { %v1595_v17 = vsel %vm1593_vm9, %v1594_v52, %v3442_v43  ;;  %v3140_v10 = vsel %vm3138_vm6, %v1594_v52, %v3442_v43 }
 0x1bb   :  { %v1592_v45 = vsel %vm1590_vm13, %v3440_v14, %v1591_v24  ;;  %v3137_v62 = vsel %vm3135_vm1, %v3440_v14, %v1591_v24 }
 0x1bc   :  { %v1596_v9 = vsel %vm1589_vm8, %v1592_v45, %v1595_v17  ;;  %v3141_v8 = vsel %vm3134_vm2, %v3137_v62, %v3140_v10 }
 0x1bd   :  { %v1597_v1 = vsel %vm1586_vm7, nan, %v1596_v9  ;;  %v3142_v33 = vsel %vm1586_vm7, nan, %v3141_v8 }
 0x1be   :  { %3157 = vst [vmem:[#allocation5 + $0xe] sm:$0x1] %v1597_v1  ;;  %3172 = vst [vmem:[#allocation5 + $0x1d] sm:$0x1] %v3142_v33 }
 0x1bf   :  { %3476 = shalt.err (!%p3473_p12)
}
 0x1c0   :  { %s3477_s26 = scalar_lea.hbm %s5146_s1, 528 }
 0x1c1   :  { %p3478_p13 = scmp.ne.s32.totalorder %s5146_s1, %s3477_s26  ;;  %p3481_p0 = scmp.lt.u32.totalorder %s3477_s26, %s5146_s1 }
 0x1c3   :  { %p3483_p1 = pnand %p3481_p0, %p3478_p13 }
 0x1c5   :  { %3486 = shalt.err (!%p3483_p1)
}
 0x1c6   :  { %3187 = dma.vmem_to_hbm [thread:$0]  %s3182_s21, 528, %s5146_s1, [#allocation4], %s3492_s17, %s3492_s17, %s3493_s18  }
 0x1c7   :  { %3489 = dma.done.wait [#allocation4], 528  }
 0x1c8   :  { %3490 = vsyncadd [#allocation4], 4294966768 }
 0x1c9   :  { %3191 = vsyncpa [#allocation3], 1 }
 0x1ca   :  { %3192 = vsyncpa [#allocation4], 1 }

</bundles_post_ra>
